<compile_context>
chip_gen: v6e
topology: v6e:2x2x1
jax: 0.10.0
libtpu: 0.0.40
codegen_flags: <defaults>
</compile_context>

<pallas_src>
import jax
import jax.numpy as jnp
from jax.experimental import pallas as pl
from jax.experimental.pallas import tpu as pltpu

VOCAB = 1400      # nn.Embedding(1400, 64)
FEAT = 64         # hidden width of fc1/fc2


def _critic_kernel(idx_ref, embT_ref, w1_ref, w2_ref, aux_ref, out_ref):
    # idx_ref  : VMEM (1, TB) int32            lane-major position ids
    # embT_ref : VMEM (FEAT, VOCAB) f32        embedding table, pre-transposed
    # w1_ref   : VMEM (FEAT, FEAT) f32         fc1.weight  (out, in)
    # w2_ref   : VMEM (FEAT, FEAT) f32         fc2.weight  (out, in)
    # aux_ref  : VMEM (FEAT, 4) f32            cols: [b1, b2, state_value.w, b3]
    # out_ref  : VMEM (1, TB) f32              lane-dense value row
    tb = idx_ref.shape[1]
    idx_row = idx_ref[...]                                       # (1, TB)

    # ---- one-hot MXU gather: emb.T @ onehot -> (FEAT, TB), feature-major ----
    row_ids = jax.lax.broadcasted_iota(jnp.int32, (VOCAB, tb), 0)
    onehot = (row_ids == idx_row).astype(jnp.float32)            # (VOCAB, TB)
    e_t = jnp.dot(embT_ref[...], onehot,
                  preferred_element_type=jnp.float32)            # (FEAT, TB)

    # ---- feature-major MLP: features on sublanes, batch on lanes ------------
    aux = aux_ref[...]                                           # (FEAT, 4)
    b1 = aux[:, 0:1]                                             # (FEAT, 1)
    b2 = aux[:, 1:2]
    w3 = aux[:, 2:3]
    b3 = aux[0:1, 3:4]                                           # (1, 1)

    h1 = jnp.dot(w1_ref[...], e_t, preferred_element_type=jnp.float32) + b1
    h1 = jnp.maximum(h1, 0.0)                                    # (FEAT, TB)
    h2 = jnp.dot(w2_ref[...], h1, preferred_element_type=jnp.float32) + b2
    h2 = jnp.maximum(h2, 0.0)                                    # (FEAT, TB)

    # state_value: contraction over the 64 sublanes -> lane-dense (1, TB).
    v = jnp.sum(h2 * w3, axis=0, keepdims=True) + b3
    out_ref[...] = v.astype(out_ref.dtype)


def prepare_params(params):
    """One-time parameter prep (hoisted out of the per-call path)."""
    emb, w1, b1, w2, b2, w3, b3 = params
    emb_t = jnp.asarray(emb, jnp.float32).T                      # (FEAT, VOCAB)
    aux = jnp.stack(
        [jnp.asarray(b1, jnp.float32),
         jnp.asarray(b2, jnp.float32),
         jnp.asarray(w3, jnp.float32)[0],
         jnp.broadcast_to(jnp.asarray(b3, jnp.float32), (FEAT,))],
        axis=1)                                                  # (FEAT, 4)
    return (emb_t,
            jnp.asarray(w1, jnp.float32),
            jnp.asarray(w2, jnp.float32),
            aux)


def _pick_tb(batch):
    # >= 2 grid steps so both v7x TensorCores get work; lanes multiple of 128;
    # capped at 512 to keep per-step overhead amortized without huge tiles.
    tb = 128 * pl.cdiv(pl.cdiv(batch, 2), 128)
    return max(128, min(512, tb))


@jax.jit
def critic_forward(x, prepared):
    """x: (B, F) float32 with position ids in column 0.  Returns (B, 1) f32."""
    emb_t, w1, w2, aux = prepared
    B = x.shape[0]
    # Clamp ids (PyTorch would raise on OOB; here we avoid silent OOB reads).
    idx = jnp.clip(x[:, 0].astype(jnp.int32), 0, VOCAB - 1)

    tb = _pick_tb(B)
    b_pad = pl.cdiv(B, tb) * tb
    idx2d = jnp.pad(idx, (0, b_pad - B)).reshape(1, b_pad)       # lane-major ids

    const = lambda i: (0, 0)   # parameters: single block, resident across steps

    out = pl.pallas_call(
        _critic_kernel,
        out_shape=jax.ShapeDtypeStruct((1, b_pad), jnp.float32),
        grid_spec=pltpu.PrefetchScalarGridSpec(
            num_scalar_prefetch=0,
            grid=(b_pad // tb,),
            in_specs=[
                pl.BlockSpec((1, tb), lambda i: (0, i)),         # ids (lane-major)
                pl.BlockSpec((FEAT, VOCAB), const),              # emb.T
                pl.BlockSpec((FEAT, FEAT), const),               # fc1.weight
                pl.BlockSpec((FEAT, FEAT), const),               # fc2.weight
                pl.BlockSpec((FEAT, 4), const),                  # packed b1/b2/w3/b3
            ],
            out_specs=pl.BlockSpec((1, tb), lambda i: (0, i)),
        ),
        compiler_params=pltpu.CompilerParams(
            dimension_semantics=("parallel",)),
    )(idx2d, emb_t, w1, w2, aux)

    return out[0, :B].reshape(B, 1)


def init_params(key):
    """Deterministic synthetic weights matching the PyTorch module layouts."""
    ks = jax.random.split(key, 7)
    s = 1.0 / float(jnp.sqrt(jnp.float32(FEAT)))
    emb = jax.random.normal(ks[0], (VOCAB, FEAT), jnp.float32)        # Embedding
    w1 = jax.random.normal(ks[1], (FEAT, FEAT), jnp.float32) * s      # fc1 (out,in)
    b1 = jax.random.normal(ks[2], (FEAT,), jnp.float32) * 0.1
    w2 = jax.random.normal(ks[3], (FEAT, FEAT), jnp.float32) * s      # fc2 (out,in)
    b2 = jax.random.normal(ks[4], (FEAT,), jnp.float32) * 0.1
    w3 = jax.random.normal(ks[5], (1, FEAT), jnp.float32) * s         # state_value
    b3 = jax.random.normal(ks[6], (1,), jnp.float32) * 0.1
    return (emb, w1, b1, w2, b2, w3, b3)


def critic_reference(x, params):
    """Plain-JAX reference of the PyTorch forward."""
    emb, w1, b1, w2, b2, w3, b3 = params
    idx = x[:, 0].astype(jnp.int32)
    e = emb[idx]
    hi = jax.lax.Precision.HIGHEST
    h1 = jnp.maximum(jnp.dot(e, w1.T, precision=hi) + b1, 0.0)
    h2 = jnp.maximum(jnp.dot(h1, w2.T, precision=hi) + b2, 0.0)
    return jnp.dot(h2, w3.T, precision=hi) + b3        # (B, 1)


if __name__ == "__main__":
    key = jax.random.PRNGKey(0)
    kp, ki, kx = jax.random.split(key, 3)
    params = init_params(kp)
    prepared = prepare_params(params)   # one-time prep, not per forward call

    # Batch of 300 states (not a tile multiple -> ragged tail, 2 grid steps),
    # column 0 carries the position id (< 1400), remaining columns unused,
    # exactly as in the PyTorch forward.
    B = 300
    ids = jax.random.randint(ki, (B,), 0, VOCAB)
    rest = jax.random.normal(kx, (B, 3), jnp.float32)
    x = jnp.concatenate([ids.astype(jnp.float32)[:, None], rest], axis=1)

    out = critic_forward(x, prepared)
    out = jax.block_until_ready(out)

    ref = critic_reference(x, params)
    assert out.shape == (B, 1), out.shape
    max_err = float(jnp.max(jnp.abs(out - ref)))
    assert jnp.allclose(out, ref, atol=5e-3, rtol=5e-3), \
        f"mismatch vs reference (max err {max_err})"

    print("KERNEL_OK")
</pallas_src>

<mosaic_0001>
module attributes {stable_mosaic.version = 11 : i64} {
  func.func @_critic_kernel(%arg0: i32, %arg1: memref<1x256xi32, #tpu.memory_space<vmem>>, %arg2: memref<64x1400xf32, #tpu.memory_space<vmem>>, %arg3: memref<64x64xf32, #tpu.memory_space<vmem>>, %arg4: memref<64x64xf32, #tpu.memory_space<vmem>>, %arg5: memref<64x4xf32, #tpu.memory_space<vmem>>, %arg6: memref<1x256xf32, #tpu.memory_space<vmem>>) attributes {dimension_semantics = [#tpu.dimension_semantics<parallel>], iteration_bounds = array<i64: 2>, scalar_prefetch = 0 : i64, scratch_operands = 0 : i64, tpu.core_type = #tpu.core_type<tc>, window_params = [{transform_indices = @transform_0, window_bounds = array<i64: 1, 256>}, {pipeline_mode = #tpu.pipeline_mode<synchronous>, transform_indices = @transform_1, window_bounds = array<i64: 64, 1400>}, {pipeline_mode = #tpu.pipeline_mode<synchronous>, transform_indices = @transform_2, window_bounds = array<i64: 64, 64>}, {pipeline_mode = #tpu.pipeline_mode<synchronous>, transform_indices = @transform_3, window_bounds = array<i64: 64, 64>}, {pipeline_mode = #tpu.pipeline_mode<synchronous>, transform_indices = @transform_4, window_bounds = array<i64: 64, 4>}, {transform_indices = @transform_5, window_bounds = array<i64: 1, 256>}]} {
    %c0 = arith.constant 0 : index
    %c0_0 = arith.constant 0 : index
    %0 = vector.load %arg1[%c0, %c0_0] : memref<1x256xi32, #tpu.memory_space<vmem>>, vector<1x256xi32>
    %1 = tpu.iota {dimensions = array<i32: 0>} : vector<1400x256xi32>
    %2 = vector.broadcast %0 : vector<1x256xi32> to vector<1400x256xi32>
    %3 = arith.cmpi eq, %1, %2 : vector<1400x256xi32>
    %4 = arith.extui %3 : vector<1400x256xi1> to vector<1400x256xi32>
    %5 = arith.sitofp %4 : vector<1400x256xi32> to vector<1400x256xf32>
    %c0_1 = arith.constant 0 : index
    %c0_2 = arith.constant 0 : index
    %6 = vector.load %arg2[%c0_1, %c0_2] : memref<64x1400xf32, #tpu.memory_space<vmem>>, vector<64x1400xf32>
    %cst = arith.constant dense<0.000000e+00> : vector<64x256xf32>
    %7 = tpu.matmul %6, %5, %cst {dimension_numbers = #tpu.dot_dimension_numbers<[1], [0], [0], [1], [0, 0, 1, 1], [], []>} : vector<64x1400xf32>, vector<1400x256xf32>, vector<64x256xf32> -> vector<64x256xf32>
    %c0_3 = arith.constant 0 : index
    %c0_4 = arith.constant 0 : index
    %8 = vector.load %arg5[%c0_3, %c0_4] : memref<64x4xf32, #tpu.memory_space<vmem>>, vector<64x4xf32>
    %9 = vector.extract_strided_slice %8 {offsets = [0, 0], sizes = [64, 1], strides = [1, 1]} : vector<64x4xf32> to vector<64x1xf32>
    %10 = vector.extract_strided_slice %8 {offsets = [0, 1], sizes = [64, 1], strides = [1, 1]} : vector<64x4xf32> to vector<64x1xf32>
    %11 = vector.extract_strided_slice %8 {offsets = [0, 2], sizes = [64, 1], strides = [1, 1]} : vector<64x4xf32> to vector<64x1xf32>
    %12 = vector.extract_strided_slice %8 {offsets = [0, 3], sizes = [1, 1], strides = [1, 1]} : vector<64x4xf32> to vector<1x1xf32>
    %c0_5 = arith.constant 0 : index
    %c0_6 = arith.constant 0 : index
    %13 = vector.load %arg3[%c0_5, %c0_6] : memref<64x64xf32, #tpu.memory_space<vmem>>, vector<64x64xf32>
    %cst_7 = arith.constant dense<0.000000e+00> : vector<64x256xf32>
    %14 = tpu.matmul %13, %7, %cst_7 {dimension_numbers = #tpu.dot_dimension_numbers<[1], [0], [0], [1], [0, 0, 1, 1], [], []>} : vector<64x64xf32>, vector<64x256xf32>, vector<64x256xf32> -> vector<64x256xf32>
    %15 = vector.broadcast %9 : vector<64x1xf32> to vector<64x256xf32>
    %16 = arith.addf %14, %15 : vector<64x256xf32>
    %cst_8 = arith.constant 0.000000e+00 : f32
    %17 = vector.broadcast %cst_8 : f32 to vector<64x256xf32>
    %18 = arith.maximumf %16, %17 : vector<64x256xf32>
    %c0_9 = arith.constant 0 : index
    %c0_10 = arith.constant 0 : index
    %19 = vector.load %arg4[%c0_9, %c0_10] : memref<64x64xf32, #tpu.memory_space<vmem>>, vector<64x64xf32>
    %cst_11 = arith.constant dense<0.000000e+00> : vector<64x256xf32>
    %20 = tpu.matmul %19, %18, %cst_11 {dimension_numbers = #tpu.dot_dimension_numbers<[1], [0], [0], [1], [0, 0, 1, 1], [], []>} : vector<64x64xf32>, vector<64x256xf32>, vector<64x256xf32> -> vector<64x256xf32>
    %21 = vector.broadcast %10 : vector<64x1xf32> to vector<64x256xf32>
    %22 = arith.addf %20, %21 : vector<64x256xf32>
    %cst_12 = arith.constant 0.000000e+00 : f32
    %23 = vector.broadcast %cst_12 : f32 to vector<64x256xf32>
    %24 = arith.maximumf %22, %23 : vector<64x256xf32>
    %25 = vector.broadcast %11 : vector<64x1xf32> to vector<64x256xf32>
    %26 = arith.mulf %24, %25 : vector<64x256xf32>
    %cst_13 = arith.constant dense<0.000000e+00> : vector<256xf32>
    %27 = vector.multi_reduction <add>, %26, %cst_13 [0] : vector<64x256xf32> to vector<256xf32>
    %28 = vector.shape_cast %27 : vector<256xf32> to vector<1x256xf32>
    %29 = vector.broadcast %12 : vector<1x1xf32> to vector<1x256xf32>
    %30 = arith.addf %28, %29 : vector<1x256xf32>
    %c0_14 = arith.constant 0 : index
    %c0_15 = arith.constant 0 : index
    %31 = vector.load %arg6[%c0_14, %c0_15] : memref<1x256xf32, #tpu.memory_space<vmem>>, vector<1x256xf32>
    tpu.vector_store %arg6[%c0_14, %c0_15], %30 {strides = array<i32>} : memref<1x256xf32, #tpu.memory_space<vmem>>, vector<1x256xf32>,
    return
  }
  func.func @transform_0(%arg0: i32) -> (i32, i32) {
    %c0_i32 = arith.constant 0 : i32
    %c0_i32_0 = arith.constant 0 : i32
    return %c0_i32, %arg0 : i32, i32
  }
  func.func @transform_1(%arg0: i32) -> (i32, i32) {
    %c0_i32 = arith.constant 0 : i32
    %c0_i32_0 = arith.constant 0 : i32
    %c0_i32_1 = arith.constant 0 : i32
    return %c0_i32, %c0_i32_0 : i32, i32
  }
  func.func @transform_2(%arg0: i32) -> (i32, i32) {
    %c0_i32 = arith.constant 0 : i32
    %c0_i32_0 = arith.constant 0 : i32
    %c0_i32_1 = arith.constant 0 : i32
    return %c0_i32, %c0_i32_0 : i32, i32
  }
  func.func @transform_3(%arg0: i32) -> (i32, i32) {
    %c0_i32 = arith.constant 0 : i32
    %c0_i32_0 = arith.constant 0 : i32
    %c0_i32_1 = arith.constant 0 : i32
    return %c0_i32, %c0_i32_0 : i32, i32
  }
  func.func @transform_4(%arg0: i32) -> (i32, i32) {
    %c0_i32 = arith.constant 0 : i32
    %c0_i32_0 = arith.constant 0 : i32
    %c0_i32_1 = arith.constant 0 : i32
    return %c0_i32, %c0_i32_0 : i32, i32
  }
  func.func @transform_5(%arg0: i32) -> (i32, i32) {
    %c0_i32 = arith.constant 0 : i32
    %c0_i32_0 = arith.constant 0 : i32
    return %c0_i32, %arg0 : i32, i32
  }
}

</mosaic_0001>

<bundles_post_ra>
// kernel: critic_forward.1
= control target key start
LH: loop header
LB: loop body
LE: loop exit
PB: predicated region body
PF: predicated region fallthrough
CT: control target
= control target key end

     0   :  { %10 = vsyncpa [#allocation3], 0  ;;  %s5011_s0 = inlined_call_operand.vmem [shape: s32[1,512], index: 0, kind: input, shape index: {}]   ;;  %s5012_s1 = inlined_call_operand.hbm [shape: f32[64,1400], index: 1, kind: input, shape index: {}]   ;;  %s5013_s2 = inlined_call_operand.vmem [shape: f32[64,64], index: 2, kind: input, shape index: {}]   ;;  %s5014_s3 = inlined_call_operand.hbm [shape: f32[64,64], index: 3, kind: input, shape index: {}]   ;;  %s5015_s4 = inlined_call_operand.vmem [shape: f32[64,4], index: 4, kind: input, shape index: {}]   ;;  %s5016_s5 = inlined_call_operand.vmem [shape: f32[1,512], index: 5, kind: output, shape index: {}]  }
   0x1   :  { %11 = vsyncpa [#allocation5], 0  ;;  %s3770_s18 = smov 0  }
   0x2 LB: > { %s3727_s19 = smov [#allocation2]   ;;  %s2854_s21 = sadd.s32 4294967295, %s3725_s18   ;;  %s3725_s18 = sphi %s3770_s18, %s17_s18  }
   0x3   : > { %s170_s20 = sshll.u32 %s3727_s19, 4  ;;  %p2856_p0 = scmp.ge.s32.totalorder %s3725_s18, 1  ;;  %s171_s20 = int_to_ptr.vmem [resolvable:$true] %s170_s20 }
   0x4   : > { %p158_p1 = scmp.lt.s32.totalorder %s3725_s18, 3  ;;  %p3784_p3 = scmp.eq.s32.totalorder %s2854_s21, 0 }
   0x5   : > { %s3728_s24 = smov [#allocation4]   ;;  %s3670_s27 = scalar_lea.vmem %s171_s20, 11264 }
   0x6   : > { %p3778_p2 = pnand %p2856_p0, %p158_p1  ;;  %s186_s25 = sshll.u32 %s3728_s24, 4  ;;  %s187_s25 = int_to_ptr.vmem [resolvable:$true] %s186_s25 }
   0x7   : > { %p3671_p7 = scmp.ne.s32.totalorder %s171_s20, %s3670_s27  ;;  %p3678_p10 = scmp.lt.s32.totalorder %s171_s20, %s171_s20 }
   0x8   : > { %p3615_p4 = pneg %p3778_p2  ;;  %p3679_p11 = scmp.lt.s32.totalorder %s3670_s27, %s3670_s27 }
   0xa   : > { %p3792_p5 = pnand %p3784_p3, %p3615_p4  ;;  %p3680_p12 = por %p3679_p11, %p3678_p10 }
   0xc   : > { %p3661_p6 = pneg %p3792_p5 }
   0xe   : > { %p3673_p8 = pnand %p3671_p7, %p3661_p6 }
  0x10   : > { %p3674_p9 = pneg %p3673_p8 }
  0x12   : > { %p3681_p13 = pnand %p3680_p12, %p3674_p9 }
  0x14   : > { %3684 = shalt.err (!%p3681_p13)
}
  0x15   : > { %s3729_s28 = smov 1408   ;;  %s3730_s29 = smov 88  }
  0x16   : > { %3618 = dma.hbm_to_vmem [thread:$0]  (!%p3792_p5), %s5012_s1, 11264, %s171_s20, [#allocation3], %s3729_s28, %s3729_s28, %s3730_s29  }
  0x17   : > { %s3696_s7 = scalar_lea.vmem %s187_s25, 1024  ;;  %p3704_p7 = scmp.lt.s32.totalorder %s187_s25, %s187_s25 }
  0x18   : > { %p3697_p0 = scmp.ne.s32.totalorder %s187_s25, %s3696_s7  ;;  %p3705_p8 = scmp.lt.s32.totalorder %s3696_s7, %s3696_s7 }
  0x1a   : > { %p3699_p1 = pnand %p3697_p0, %p3661_p6  ;;  %p3706_p10 = por %p3705_p8, %p3704_p7 }
  0x1c   : > { %p3700_p4 = pneg %p3699_p1 }
  0x1e   : > { %p3707_p9 = pnand %p3706_p10, %p3700_p4 }
  0x20   : > { %3710 = shalt.err (!%p3707_p9)
}
  0x21   : > { %s3731_s8 = smov 128   ;;  %s3732_s9 = smov 8  }
  0x22   : > { %3621 = dma.hbm_to_vmem [thread:$0]  (!%p3792_p5), %s5014_s3, 1024, %s187_s25, [#allocation5], %s3731_s8, %s3731_s8, %s3732_s9  }
  0x23   : > { %213 = sbr.rel (%p3778_p2) target bundleno = 990 (0x3de), region = 40 }
  0x28   : > { %3716 = dma.done.wait (%p3784_p3), [#allocation3], 11264  }
  0x29   : > { %3718 = vsyncadd (%p3784_p3), [#allocation3], 4294956032 }
  0x2a   : > { %3720 = dma.done.wait (%p3784_p3), [#allocation5], 1024  }
  0x2b   : > { %3722 = vsyncadd (%p3784_p3), [#allocation5], 4294966272  ;;  %s2863_s12 = sshll.u32 %s2854_s21, 1  ;;  %v5017_v0 = vlaneseq  ;;  %v1489_v13 = vld [vmem:[#allocation2 + $0x8] sm:$0xff]  ;;  %v1491_v14 = vld [vmem:[#allocation2 + $0x18] sm:$0xff]  ;;  %v3733_v17 = vmov 1.0  }
  0x2c   : > { %p244_p5 = scmp.lt.s32.totalorder %s2863_s12, 3  ;;  %1665 = vmatprep.mubr.f32.mxu0 %v1489_v13  ;;  %1778 = vmatprep.mubr.f32.mxu1 %v1491_v14 }
  0x2d   : > { %v3827_v1 = vshrl.u32 %v5017_v0, 7 }
  0x2e   : > { %s5097_s12 = smov (!%p244_p5, %s2863_s12), 3 }
  0x2f   : > { %5040 = vst [vmem:[#allocation8_spill] sm:$0xff] %v3827_v1  ;;  %v436_v2 = vsub.s32 1, %v3827_v1  ;;  %v432_v3 = vsub.s32 0, %v3827_v1  ;;  %s246_s15 = scalar_lea.vmem %s5011_s0, %s5097_s12  ;;  %v270_v4 = vadd.s32 120, %v3827_v1  ;;  %v302_v5 = vadd.s32 376, %v3827_v1  ;;  %s251_s28 = scalar_lea.vmem %s5016_s5, %s5097_s12 }
  0x30   : > { %v253_v6 = vld [vmem:[%s246_s15] sm:$0x3]  ;;  %v269_v7 = vadd.s32 112, %v3827_v1  ;;  %v301_v8 = vadd.s32 368, %v3827_v1  ;;  %v268_v11 = vadd.s32 104, %v3827_v1  ;;  %v300_v12 = vadd.s32 360, %v3827_v1 }
  0x31   : > { %v3841_v9 = vrot.slane %v253_v6, %v436_v2  ;;  %v3843_v10 = vrot.slane %v253_v6, %v432_v3  ;;  %v267_v15 = vadd.s32 96, %v3827_v1  ;;  %v299_v16 = vadd.s32 352, %v3827_v1 }
  0x32   : > { %v266_v18 = vadd.s32 88, %v3827_v1  ;;  %v298_v19 = vadd.s32 344, %v3827_v1  ;;  %v265_v20 = vadd.s32 80, %v3827_v1  ;;  %v297_v21 = vadd.s32 336, %v3827_v1 }
  0x33   : > { %vm469_vm0 = vcmp.eq.s32.totalorder %v270_v4, %v3841_v9  ;;  %vm533_vm1 = vcmp.eq.s32.totalorder %v302_v5, %v3841_v9  ;;  %vm468_vm2 = vcmp.eq.s32.totalorder %v270_v4, %v3843_v10  ;;  %vm532_vm3 = vcmp.eq.s32.totalorder %v302_v5, %v3843_v10 }
  0x34   : > { %3215 = vmatprep.subr.msk.mxu0 %vm469_vm0, %v3733_v17  ;;  %3279 = vmatprep.subr.msk.mxu1 %vm533_vm1, %v3733_v17  ;;  %vm467_vm4 = vcmp.eq.s32.totalorder %v269_v7, %v3841_v9  ;;  %vm531_vm5 = vcmp.eq.s32.totalorder %v301_v8, %v3841_v9  ;;  %vm466_vm6 = vcmp.eq.s32.totalorder %v269_v7, %v3843_v10  ;;  %v264_v22 = vadd.s32 72, %v3827_v1 }
  0x35   : > { %3216 = vmatpush1.msk.msra.mxu0 %vm468_vm2, %v3733_v17  ;;  %3280 = vmatpush1.msk.msra.mxu1 %vm532_vm3, %v3733_v17  ;;  %vm530_vm7 = vcmp.eq.s32.totalorder %v301_v8, %v3843_v10  ;;  %vm465_vm8 = vcmp.eq.s32.totalorder %v268_v11, %v3841_v9  ;;  %vm529_vm9 = vcmp.eq.s32.totalorder %v300_v12, %v3841_v9  ;;  %v296_v23 = vadd.s32 328, %v3827_v1 }
  0x36   : > { %3217 = vmatprep.subr.msk.mxu0 %vm467_vm4, %v3733_v17  ;;  %3281 = vmatprep.subr.msk.mxu1 %vm531_vm5, %v3733_v17  ;;  %vm464_vm10 = vcmp.eq.s32.totalorder %v268_v11, %v3843_v10  ;;  %vm528_vm11 = vcmp.eq.s32.totalorder %v300_v12, %v3843_v10  ;;  %vm463_vm12 = vcmp.eq.s32.totalorder %v267_v15, %v3841_v9  ;;  %v263_v24 = vadd.s32 64, %v3827_v1 }
  0x37   : > { %3218 = vmatpush1.msk.msra.mxu0 %vm466_vm6, %v3733_v17  ;;  %3282 = vmatpush1.msk.msra.mxu1 %vm530_vm7, %v3733_v17  ;;  %vm527_vm13 = vcmp.eq.s32.totalorder %v299_v16, %v3841_v9  ;;  %vm462_vm14 = vcmp.eq.s32.totalorder %v267_v15, %v3843_v10  ;;  %vm526_vm15 = vcmp.eq.s32.totalorder %v299_v16, %v3843_v10  ;;  %v295_v25 = vadd.s32 320, %v3827_v1 }
  0x38   : > { %3219 = vmatprep.subr.msk.mxu0 %vm465_vm8, %v3733_v17  ;;  %3283 = vmatprep.subr.msk.mxu1 %vm529_vm9, %v3733_v17  ;;  %vm461_vm0 = vcmp.eq.s32.totalorder %v266_v18, %v3841_v9  ;;  %vm525_vm1 = vcmp.eq.s32.totalorder %v298_v19, %v3841_v9  ;;  %vm460_vm2 = vcmp.eq.s32.totalorder %v266_v18, %v3843_v10  ;;  %v262_v26 = vadd.s32 56, %v3827_v1  ;;  %v1488_v18 = vld [vmem:[#allocation2] sm:$0xff] }
  0x39   : > { %3220 = vmatpush1.msk.msra.mxu0 %vm464_vm10, %v3733_v17  ;;  %3284 = vmatpush1.msk.msra.mxu1 %vm528_vm11, %v3733_v17  ;;  %vm524_vm3 = vcmp.eq.s32.totalorder %v298_v19, %v3843_v10  ;;  %vm459_vm4 = vcmp.eq.s32.totalorder %v265_v20, %v3841_v9  ;;  %vm523_vm5 = vcmp.eq.s32.totalorder %v297_v21, %v3841_v9  ;;  %v294_v27 = vadd.s32 312, %v3827_v1  ;;  %v1490_v19 = vld [vmem:[#allocation2 + $0x10] sm:$0xff] }
  0x3a   : > { %3221 = vmatprep.subr.msk.mxu0 %vm463_vm12, %v3733_v17  ;;  %3285 = vmatprep.subr.msk.mxu1 %vm527_vm13, %v3733_v17  ;;  %vm458_vm6 = vcmp.eq.s32.totalorder %v265_v20, %v3843_v10  ;;  %vm522_vm7 = vcmp.eq.s32.totalorder %v297_v21, %v3843_v10  ;;  %vm457_vm8 = vcmp.eq.s32.totalorder %v264_v22, %v3841_v9  ;;  %v261_v28 = vadd.s32 48, %v3827_v1 }
  0x3b   : > { %3222 = vmatpush1.msk.msra.mxu0 %vm462_vm14, %v3733_v17  ;;  %3286 = vmatpush1.msk.msra.mxu1 %vm526_vm15, %v3733_v17  ;;  %vm521_vm9 = vcmp.eq.s32.totalorder %v296_v23, %v3841_v9  ;;  %vm456_vm10 = vcmp.eq.s32.totalorder %v264_v22, %v3843_v10  ;;  %vm520_vm11 = vcmp.eq.s32.totalorder %v296_v23, %v3843_v10  ;;  %v293_v29 = vadd.s32 304, %v3827_v1 }
  0x3c   : > { %3223 = vmatprep.subr.msk.mxu0 %vm461_vm0, %v3733_v17  ;;  %3287 = vmatprep.subr.msk.mxu1 %vm525_vm1, %v3733_v17  ;;  %vm455_vm12 = vcmp.eq.s32.totalorder %v263_v24, %v3841_v9  ;;  %vm519_vm13 = vcmp.eq.s32.totalorder %v295_v25, %v3841_v9  ;;  %vm454_vm14 = vcmp.eq.s32.totalorder %v263_v24, %v3843_v10  ;;  %v260_v30 = vadd.s32 40, %v3827_v1 }
  0x3d   : > { %3224 = vmatpush1.msk.msra.mxu0 %vm460_vm2, %v3733_v17  ;;  %3288 = vmatpush1.msk.msra.mxu1 %vm524_vm3, %v3733_v17  ;;  %vm518_vm15 = vcmp.eq.s32.totalorder %v295_v25, %v3843_v10  ;;  %vm453_vm0 = vcmp.eq.s32.totalorder %v262_v26, %v3841_v9  ;;  %vm517_vm1 = vcmp.eq.s32.totalorder %v294_v27, %v3841_v9  ;;  %v292_v31 = vadd.s32 296, %v3827_v1 }
  0x3e   : > { %3225 = vmatprep.subr.msk.mxu0 %vm459_vm4, %v3733_v17  ;;  %3289 = vmatprep.subr.msk.mxu1 %vm523_vm5, %v3733_v17  ;;  %vm452_vm2 = vcmp.eq.s32.totalorder %v262_v26, %v3843_v10  ;;  %vm516_vm3 = vcmp.eq.s32.totalorder %v294_v27, %v3843_v10  ;;  %vm451_vm4 = vcmp.eq.s32.totalorder %v261_v28, %v3841_v9  ;;  %v259_v32 = vadd.s32 32, %v3827_v1 }
  0x3f   : > { %3226 = vmatpush1.msk.msra.mxu0 %vm458_vm6, %v3733_v17  ;;  %3290 = vmatpush1.msk.msra.mxu1 %vm522_vm7, %v3733_v17  ;;  %vm515_vm5 = vcmp.eq.s32.totalorder %v293_v29, %v3841_v9  ;;  %v291_v33 = vadd.s32 288, %v3827_v1  ;;  %vm450_vm6 = vcmp.eq.s32.totalorder %v261_v28, %v3843_v10  ;;  %vm514_vm7 = vcmp.eq.s32.totalorder %v293_v29, %v3843_v10 }
  0x40   : > { %3227 = vmatprep.subr.msk.mxu0 %vm457_vm8, %v3733_v17  ;;  %3291 = vmatprep.subr.msk.mxu1 %vm521_vm9, %v3733_v17  ;;  %vm449_vm8 = vcmp.eq.s32.totalorder %v260_v30, %v3841_v9  ;;  %vm513_vm9 = vcmp.eq.s32.totalorder %v292_v31, %v3841_v9  ;;  %v258_v34 = vadd.s32 24, %v3827_v1  ;;  %v290_v35 = vadd.s32 280, %v3827_v1 }
  0x41   : > { %3228 = vmatpush1.msk.msra.mxu0 %vm456_vm10, %v3733_v17  ;;  %3292 = vmatpush1.msk.msra.mxu1 %vm520_vm11, %v3733_v17  ;;  %vm448_vm10 = vcmp.eq.s32.totalorder %v260_v30, %v3843_v10  ;;  %vm512_vm11 = vcmp.eq.s32.totalorder %v292_v31, %v3843_v10  ;;  %v257_v36 = vadd.s32 16, %v3827_v1  ;;  %v289_v37 = vadd.s32 272, %v3827_v1 }
  0x42   : > { %3229 = vmatprep.subr.msk.mxu0 %vm455_vm12, %v3733_v17  ;;  %3293 = vmatprep.subr.msk.mxu1 %vm519_vm13, %v3733_v17  ;;  %vm447_vm12 = vcmp.eq.s32.totalorder %v259_v32, %v3841_v9  ;;  %vm511_vm13 = vcmp.eq.s32.totalorder %v291_v33, %v3841_v9  ;;  %v256_v38 = vadd.s32 8, %v3827_v1  ;;  %v288_v39 = vadd.s32 264, %v3827_v1 }
  0x43   : > { %3230 = vmatpush1.msk.msra.mxu0 %vm454_vm14, %v3733_v17  ;;  %3294 = vmatpush1.msk.msra.mxu1 %vm518_vm15, %v3733_v17  ;;  %vm446_vm14 = vcmp.eq.s32.totalorder %v259_v32, %v3843_v10  ;;  %vm510_vm15 = vcmp.eq.s32.totalorder %v291_v33, %v3843_v10  ;;  %v287_v40 = vadd.s32 256, %v3827_v1  ;;  %v286_v41 = vadd.s32 248, %v3827_v1 }
  0x44   : > { %3231 = vmatprep.subr.msk.mxu0 %vm453_vm0, %v3733_v17  ;;  %3295 = vmatprep.subr.msk.mxu1 %vm517_vm1, %v3733_v17  ;;  %vm445_vm0 = vcmp.eq.s32.totalorder %v258_v34, %v3841_v9  ;;  %vm509_vm1 = vcmp.eq.s32.totalorder %v290_v35, %v3841_v9  ;;  %v318_v42 = vadd.s32 504, %v3827_v1  ;;  %v285_v43 = vadd.s32 240, %v3827_v1 }
  0x45   : > { %3232 = vmatpush1.msk.msra.mxu0 %vm452_vm2, %v3733_v17  ;;  %3296 = vmatpush1.msk.msra.mxu1 %vm516_vm3, %v3733_v17  ;;  %vm444_vm2 = vcmp.eq.s32.totalorder %v258_v34, %v3843_v10  ;;  %vm508_vm3 = vcmp.eq.s32.totalorder %v290_v35, %v3843_v10  ;;  %v317_v44 = vadd.s32 496, %v3827_v1  ;;  %v284_v45 = vadd.s32 232, %v3827_v1 }
  0x46   : > { %3233 = vmatprep.subr.msk.mxu0 %vm451_vm4, %v3733_v17  ;;  %3297 = vmatprep.subr.msk.mxu1 %vm515_vm5, %v3733_v17  ;;  %vm443_vm4 = vcmp.eq.s32.totalorder %v257_v36, %v3841_v9  ;;  %vm507_vm5 = vcmp.eq.s32.totalorder %v289_v37, %v3841_v9  ;;  %v316_v46 = vadd.s32 488, %v3827_v1  ;;  %v283_v47 = vadd.s32 224, %v3827_v1 }
  0x47   : > { %3234 = vmatpush1.msk.msra.mxu0 %vm450_vm6, %v3733_v17  ;;  %3298 = vmatpush1.msk.msra.mxu1 %vm514_vm7, %v3733_v17  ;;  %vm442_vm6 = vcmp.eq.s32.totalorder %v257_v36, %v3843_v10  ;;  %vm506_vm7 = vcmp.eq.s32.totalorder %v289_v37, %v3843_v10  ;;  %v315_v48 = vadd.s32 480, %v3827_v1  ;;  %v282_v49 = vadd.s32 216, %v3827_v1 }
  0x48   : > { %3235 = vmatprep.subr.msk.mxu0 %vm449_vm8, %v3733_v17  ;;  %3299 = vmatprep.subr.msk.mxu1 %vm513_vm9, %v3733_v17  ;;  %vm441_vm8 = vcmp.eq.s32.totalorder %v256_v38, %v3841_v9  ;;  %vm505_vm9 = vcmp.eq.s32.totalorder %v288_v39, %v3841_v9  ;;  %v314_v50 = vadd.s32 472, %v3827_v1  ;;  %v281_v51 = vadd.s32 208, %v3827_v1 }
  0x49   : > { %3236 = vmatpush1.msk.msra.mxu0 %vm448_vm10, %v3733_v17  ;;  %3300 = vmatpush1.msk.msra.mxu1 %vm512_vm11, %v3733_v17  ;;  %vm440_vm10 = vcmp.eq.s32.totalorder %v256_v38, %v3843_v10  ;;  %vm504_vm11 = vcmp.eq.s32.totalorder %v288_v39, %v3843_v10  ;;  %v313_v52 = vadd.s32 464, %v3827_v1  ;;  %v280_v53 = vadd.s32 200, %v3827_v1 }
  0x4a   : > { %3237 = vmatprep.subr.msk.mxu0 %vm447_vm12, %v3733_v17  ;;  %3301 = vmatprep.subr.msk.mxu1 %vm511_vm13, %v3733_v17  ;;  %vm439_vm12 = vcmp.eq.s32.totalorder %v3827_v1, %v3841_v9  ;;  %vm503_vm13 = vcmp.eq.s32.totalorder %v287_v40, %v3841_v9  ;;  %v312_v54 = vadd.s32 456, %v3827_v1  ;;  %v279_v55 = vadd.s32 192, %v3827_v1 }
  0x4b   : > { %3238 = vmatpush1.msk.msra.mxu0 %vm446_vm14, %v3733_v17  ;;  %3302 = vmatpush1.msk.msra.mxu1 %vm510_vm15, %v3733_v17  ;;  %vm438_vm14 = vcmp.eq.s32.totalorder %v3827_v1, %v3843_v10  ;;  %vm502_vm15 = vcmp.eq.s32.totalorder %v287_v40, %v3843_v10  ;;  %v311_v56 = vadd.s32 448, %v3827_v1  ;;  %v278_v57 = vadd.s32 184, %v3827_v1 }
  0x4c   : > { %3239 = vmatprep.subr.msk.mxu0 %vm445_vm0, %v3733_v17  ;;  %3303 = vmatprep.subr.msk.mxu1 %vm509_vm1, %v3733_v17  ;;  %vm501_vm0 = vcmp.eq.s32.totalorder %v286_v41, %v3841_v9  ;;  %vm565_vm1 = vcmp.eq.s32.totalorder %v318_v42, %v3841_v9  ;;  %v310_v58 = vadd.s32 440, %v3827_v1  ;;  %v277_v59 = vadd.s32 176, %v3827_v1 }
  0x4d   : > { %3240 = vmatpush1.msk.msra.mxu0 %vm444_vm2, %v3733_v17  ;;  %3304 = vmatpush1.msk.msra.mxu1 %vm508_vm3, %v3733_v17  ;;  %vm500_vm2 = vcmp.eq.s32.totalorder %v286_v41, %v3843_v10  ;;  %vm564_vm3 = vcmp.eq.s32.totalorder %v318_v42, %v3843_v10  ;;  %v309_v60 = vadd.s32 432, %v3827_v1  ;;  %v276_v61 = vadd.s32 168, %v3827_v1 }
  0x4e   : > { %3241 = vmatprep.subr.msk.mxu0 %vm443_vm4, %v3733_v17  ;;  %3305 = vmatprep.subr.msk.mxu1 %vm507_vm5, %v3733_v17  ;;  %vm499_vm4 = vcmp.eq.s32.totalorder %v285_v43, %v3841_v9  ;;  %vm563_vm5 = vcmp.eq.s32.totalorder %v317_v44, %v3841_v9  ;;  %v308_v62 = vadd.s32 424, %v3827_v1  ;;  %v275_v63 = vadd.s32 160, %v3827_v1 }
  0x4f   : > { %3242 = vmatpush1.msk.msra.mxu0 %vm442_vm6, %v3733_v17  ;;  %3306 = vmatpush1.msk.msra.mxu1 %vm506_vm7, %v3733_v17  ;;  %vm498_vm6 = vcmp.eq.s32.totalorder %v285_v43, %v3843_v10  ;;  %vm562_vm7 = vcmp.eq.s32.totalorder %v317_v44, %v3843_v10  ;;  %v307_v2 = vadd.s32 416, %v3827_v1  ;;  %v274_v3 = vadd.s32 152, %v3827_v1 }
  0x50   : > { %3243 = vmatprep.subr.msk.mxu0 %vm441_vm8, %v3733_v17  ;;  %3307 = vmatprep.subr.msk.mxu1 %vm505_vm9, %v3733_v17  ;;  %vm497_vm8 = vcmp.eq.s32.totalorder %v284_v45, %v3841_v9  ;;  %vm561_vm9 = vcmp.eq.s32.totalorder %v316_v46, %v3841_v9  ;;  %v306_v4 = vadd.s32 408, %v3827_v1  ;;  %v273_v5 = vadd.s32 144, %v3827_v1 }
  0x51   : > { %3244 = vmatpush1.msk.msra.mxu0 %vm440_vm10, %v3733_v17  ;;  %3308 = vmatpush1.msk.msra.mxu1 %vm504_vm11, %v3733_v17  ;;  %vm496_vm10 = vcmp.eq.s32.totalorder %v284_v45, %v3843_v10  ;;  %vm560_vm11 = vcmp.eq.s32.totalorder %v316_v46, %v3843_v10  ;;  %v305_v6 = vadd.s32 400, %v3827_v1  ;;  %v272_v7 = vadd.s32 136, %v3827_v1 }
  0x52   : > { %3245 = vmatprep.subr.msk.mxu0 %vm439_vm12, %v3733_v17  ;;  %3309 = vmatprep.subr.msk.mxu1 %vm503_vm13, %v3733_v17  ;;  %vm495_vm12 = vcmp.eq.s32.totalorder %v283_v47, %v3841_v9  ;;  %vm559_vm13 = vcmp.eq.s32.totalorder %v315_v48, %v3841_v9  ;;  %v304_v8 = vadd.s32 392, %v3827_v1  ;;  %v271_v11 = vadd.s32 128, %v3827_v1 }
  0x53   : > { %3246 = vmatpush1.msk.msra.mxu0 %vm438_vm14, %v3733_v17  ;;  %3310 = vmatpush1.msk.msra.mxu1 %vm502_vm15, %v3733_v17  ;;  %vm494_vm14 = vcmp.eq.s32.totalorder %v283_v47, %v3843_v10  ;;  %vm558_vm15 = vcmp.eq.s32.totalorder %v315_v48, %v3843_v10  ;;  %v303_v12 = vadd.s32 384, %v3827_v1  ;;  %v334_v13 = vadd.s32 632, %v3827_v1 }
  0x54   : > { %3247 = vmatprep.subr.msk.mxu0 %vm501_vm0, %v3733_v17  ;;  %3311 = vmatprep.subr.msk.mxu1 %vm565_vm1, %v3733_v17  ;;  %vm493_vm0 = vcmp.eq.s32.totalorder %v282_v49, %v3841_v9  ;;  %vm557_vm1 = vcmp.eq.s32.totalorder %v314_v50, %v3841_v9  ;;  %v366_v14 = vadd.s32 888, %v3827_v1  ;;  %v333_v15 = vadd.s32 624, %v3827_v1 }
  0x55   : > { %3248 = vmatpush2.msk.msra.mxu0 %vm500_vm2, %v3733_v17  ;;  %3312 = vmatpush2.msk.msra.mxu1 %vm564_vm3, %v3733_v17  ;;  %vm492_vm2 = vcmp.eq.s32.totalorder %v282_v49, %v3843_v10  ;;  %vm556_vm3 = vcmp.eq.s32.totalorder %v314_v50, %v3843_v10  ;;  %v365_v16 = vadd.s32 880, %v3827_v1  ;;  %v332_v20 = vadd.s32 616, %v3827_v1 }
  0x56   : > { %3249 = vmatprep.subr.msk.mxu0 %vm499_vm4, %v3733_v17  ;;  %3313 = vmatprep.subr.msk.mxu1 %vm563_vm5, %v3733_v17  ;;  %vm491_vm4 = vcmp.eq.s32.totalorder %v281_v51, %v3841_v9  ;;  %vm555_vm5 = vcmp.eq.s32.totalorder %v313_v52, %v3841_v9  ;;  %v364_v21 = vadd.s32 872, %v3827_v1  ;;  %v331_v22 = vadd.s32 608, %v3827_v1 }
  0x57   : > { %3250 = vmatpush2.msk.msra.mxu0 %vm498_vm6, %v3733_v17  ;;  %3314 = vmatpush2.msk.msra.mxu1 %vm562_vm7, %v3733_v17  ;;  %vm490_vm6 = vcmp.eq.s32.totalorder %v281_v51, %v3843_v10  ;;  %vm554_vm7 = vcmp.eq.s32.totalorder %v313_v52, %v3843_v10  ;;  %v363_v23 = vadd.s32 864, %v3827_v1  ;;  %v330_v24 = vadd.s32 600, %v3827_v1  ;;  %v1500_v51 = vld [vmem:[#allocation2 + $0x60] sm:$0xff]  ;;  %v1502_v52 = vld [vmem:[#allocation2 + $0x70] sm:$0xff] }
  0x58   : > { %3251 = vmatprep.subr.msk.mxu0 %vm497_vm8, %v3733_v17  ;;  %3315 = vmatprep.subr.msk.mxu1 %vm561_vm9, %v3733_v17  ;;  %vm489_vm8 = vcmp.eq.s32.totalorder %v280_v53, %v3841_v9  ;;  %vm553_vm9 = vcmp.eq.s32.totalorder %v312_v54, %v3841_v9  ;;  %v362_v25 = vadd.s32 856, %v3827_v1  ;;  %v329_v26 = vadd.s32 592, %v3827_v1 }
  0x59   : > { %3252 = vmatpush2.msk.msra.mxu0 %vm496_vm10, %v3733_v17  ;;  %3316 = vmatpush2.msk.msra.mxu1 %vm560_vm11, %v3733_v17  ;;  %vm488_vm10 = vcmp.eq.s32.totalorder %v280_v53, %v3843_v10  ;;  %vm552_vm11 = vcmp.eq.s32.totalorder %v312_v54, %v3843_v10  ;;  %v361_v27 = vadd.s32 848, %v3827_v1  ;;  %v328_v28 = vadd.s32 584, %v3827_v1 }
  0x5a   : > { %3253 = vmatprep.subr.msk.mxu0 %vm495_vm12, %v3733_v17  ;;  %3317 = vmatprep.subr.msk.mxu1 %vm559_vm13, %v3733_v17  ;;  %vm487_vm12 = vcmp.eq.s32.totalorder %v279_v55, %v3841_v9  ;;  %vm551_vm13 = vcmp.eq.s32.totalorder %v311_v56, %v3841_v9  ;;  %v360_v29 = vadd.s32 840, %v3827_v1  ;;  %v327_v30 = vadd.s32 576, %v3827_v1 }
  0x5b   : > { %3254 = vmatpush2.msk.msra.mxu0 %vm494_vm14, %v3733_v17  ;;  %3318 = vmatpush2.msk.msra.mxu1 %vm558_vm15, %v3733_v17  ;;  %vm486_vm14 = vcmp.eq.s32.totalorder %v279_v55, %v3843_v10  ;;  %vm550_vm15 = vcmp.eq.s32.totalorder %v311_v56, %v3843_v10  ;;  %v359_v31 = vadd.s32 832, %v3827_v1  ;;  %v326_v32 = vadd.s32 568, %v3827_v1  ;;  %v1499_v55 = vld [vmem:[#allocation2 + $0x58] sm:$0xff]  ;;  %v1501_v56 = vld [vmem:[#allocation2 + $0x68] sm:$0xff] }
  0x5c   : > { %3255 = vmatprep.subr.msk.mxu0 %vm493_vm0, %v3733_v17  ;;  %3319 = vmatprep.subr.msk.mxu1 %vm557_vm1, %v3733_v17  ;;  %vm485_vm0 = vcmp.eq.s32.totalorder %v278_v57, %v3841_v9  ;;  %vm549_vm1 = vcmp.eq.s32.totalorder %v310_v58, %v3841_v9  ;;  %v358_v33 = vadd.s32 824, %v3827_v1  ;;  %v325_v34 = vadd.s32 560, %v3827_v1 }
  0x5d   : > { %3256 = vmatpush2.msk.msra.mxu0 %vm492_vm2, %v3733_v17  ;;  %3320 = vmatpush2.msk.msra.mxu1 %vm556_vm3, %v3733_v17  ;;  %vm484_vm2 = vcmp.eq.s32.totalorder %v278_v57, %v3843_v10  ;;  %vm548_vm3 = vcmp.eq.s32.totalorder %v310_v58, %v3843_v10  ;;  %v357_v35 = vadd.s32 816, %v3827_v1  ;;  %v324_v36 = vadd.s32 552, %v3827_v1 }
  0x5e   : > { %3257 = vmatprep.subr.msk.mxu0 %vm491_vm4, %v3733_v17  ;;  %3321 = vmatprep.subr.msk.mxu1 %vm555_vm5, %v3733_v17  ;;  %vm483_vm4 = vcmp.eq.s32.totalorder %v277_v59, %v3841_v9  ;;  %vm547_vm5 = vcmp.eq.s32.totalorder %v309_v60, %v3841_v9  ;;  %v356_v37 = vadd.s32 808, %v3827_v1  ;;  %v323_v38 = vadd.s32 544, %v3827_v1 }
  0x5f   : > { %3258 = vmatpush2.msk.msra.mxu0 %vm490_vm6, %v3733_v17  ;;  %3322 = vmatpush2.msk.msra.mxu1 %vm554_vm7, %v3733_v17  ;;  %vm482_vm6 = vcmp.eq.s32.totalorder %v277_v59, %v3843_v10  ;;  %vm546_vm7 = vcmp.eq.s32.totalorder %v309_v60, %v3843_v10  ;;  %v355_v39 = vadd.s32 800, %v3827_v1  ;;  %v322_v40 = vadd.s32 536, %v3827_v1  ;;  %v1511_v59 = vld [vmem:[#allocation2 + $0xb8] sm:$0xff]  ;;  %v1513_v60 = vld [vmem:[#allocation2 + $0xc8] sm:$0xff] }
  0x60   : > { %3259 = vmatprep.subr.msk.mxu0 %vm489_vm8, %v3733_v17  ;;  %3323 = vmatprep.subr.msk.mxu1 %vm553_vm9, %v3733_v17  ;;  %vm481_vm8 = vcmp.eq.s32.totalorder %v276_v61, %v3841_v9  ;;  %vm545_vm9 = vcmp.eq.s32.totalorder %v308_v62, %v3841_v9  ;;  %v354_v41 = vadd.s32 792, %v3827_v1  ;;  %v321_v42 = vadd.s32 528, %v3827_v1 }
  0x61   : > { %3260 = vmatpush2.msk.msra.mxu0 %vm488_vm10, %v3733_v17  ;;  %3324 = vmatpush2.msk.msra.mxu1 %vm552_vm11, %v3733_v17  ;;  %vm480_vm10 = vcmp.eq.s32.totalorder %v276_v61, %v3843_v10  ;;  %vm544_vm11 = vcmp.eq.s32.totalorder %v308_v62, %v3843_v10  ;;  %v353_v43 = vadd.s32 784, %v3827_v1  ;;  %v320_v44 = vadd.s32 520, %v3827_v1 }
  0x62   : > { %3261 = vmatprep.subr.msk.mxu0 %vm487_vm12, %v3733_v17  ;;  %3325 = vmatprep.subr.msk.mxu1 %vm551_vm13, %v3733_v17  ;;  %vm479_vm12 = vcmp.eq.s32.totalorder %v275_v63, %v3841_v9  ;;  %vm543_vm13 = vcmp.eq.s32.totalorder %v307_v2, %v3841_v9  ;;  %v352_v45 = vadd.s32 776, %v3827_v1  ;;  %v319_v46 = vadd.s32 512, %v3827_v1 }
  0x63   : > { %3262 = vmatpush2.msk.msra.mxu0 %vm486_vm14, %v3733_v17  ;;  %3326 = vmatpush2.msk.msra.mxu1 %vm550_vm15, %v3733_v17  ;;  %vm478_vm14 = vcmp.eq.s32.totalorder %v275_v63, %v3843_v10  ;;  %vm542_vm15 = vcmp.eq.s32.totalorder %v307_v2, %v3843_v10  ;;  %v351_v47 = vadd.s32 768, %v3827_v1  ;;  %v350_v48 = vadd.s32 760, %v3827_v1  ;;  %v1510_v63 = vld [vmem:[#allocation2 + $0xb0] sm:$0xff]  ;;  %v1512_v2 = vld [vmem:[#allocation2 + $0xc0] sm:$0xff] }
  0x64   : > { %3263 = vmatprep.subr.msk.mxu0 %vm485_vm0, %v3733_v17  ;;  %3327 = vmatprep.subr.msk.mxu1 %vm549_vm1, %v3733_v17  ;;  %vm477_vm0 = vcmp.eq.s32.totalorder %v274_v3, %v3841_v9  ;;  %vm541_vm1 = vcmp.eq.s32.totalorder %v306_v4, %v3841_v9  ;;  %v349_v49 = vadd.s32 752, %v3827_v1  ;;  %v382_v50 = vadd.s32 1016, %v3827_v1 }
  0x65   : > { %3264 = vmatpush2.msk.msra.mxu0 %vm484_vm2, %v3733_v17  ;;  %3328 = vmatpush2.msk.msra.mxu1 %vm548_vm3, %v3733_v17  ;;  %vm476_vm2 = vcmp.eq.s32.totalorder %v274_v3, %v3843_v10  ;;  %vm540_vm3 = vcmp.eq.s32.totalorder %v306_v4, %v3843_v10  ;;  %v348_v53 = vadd.s32 744, %v3827_v1  ;;  %v381_v54 = vadd.s32 1008, %v3827_v1 }
  0x66   : > { %3265 = vmatprep.subr.msk.mxu0 %vm483_vm4, %v3733_v17  ;;  %3329 = vmatprep.subr.msk.mxu1 %vm547_vm5, %v3733_v17  ;;  %vm475_vm4 = vcmp.eq.s32.totalorder %v273_v5, %v3841_v9  ;;  %vm539_vm5 = vcmp.eq.s32.totalorder %v305_v6, %v3841_v9  ;;  %v347_v57 = vadd.s32 736, %v3827_v1  ;;  %v380_v58 = vadd.s32 1000, %v3827_v1 }
  0x67   : > { %3266 = vmatpush2.msk.msra.mxu0 %vm482_vm6, %v3733_v17  ;;  %3330 = vmatpush2.msk.msra.mxu1 %vm546_vm7, %v3733_v17  ;;  %vm474_vm6 = vcmp.eq.s32.totalorder %v273_v5, %v3843_v10  ;;  %vm538_vm7 = vcmp.eq.s32.totalorder %v305_v6, %v3843_v10  ;;  %v346_v61 = vadd.s32 728, %v3827_v1  ;;  %v379_v62 = vadd.s32 992, %v3827_v1  ;;  %v1522_v5 = vld [vmem:[#allocation2 + $0x110] sm:$0xff]  ;;  %v1524_v6 = vld [vmem:[#allocation2 + $0x120] sm:$0xff] }
  0x68   : > { %3267 = vmatprep.subr.msk.mxu0 %vm481_vm8, %v3733_v17  ;;  %3331 = vmatprep.subr.msk.mxu1 %vm545_vm9, %v3733_v17  ;;  %vm473_vm8 = vcmp.eq.s32.totalorder %v272_v7, %v3841_v9  ;;  %vm537_vm9 = vcmp.eq.s32.totalorder %v304_v8, %v3841_v9  ;;  %v345_v3 = vadd.s32 720, %v3827_v1  ;;  %v378_v4 = vadd.s32 984, %v3827_v1 }
  0x69   : > { %3268 = vmatpush2.msk.msra.mxu0 %vm480_vm10, %v3733_v17  ;;  %3332 = vmatpush2.msk.msra.mxu1 %vm544_vm11, %v3733_v17  ;;  %vm472_vm10 = vcmp.eq.s32.totalorder %v272_v7, %v3843_v10  ;;  %vm536_vm11 = vcmp.eq.s32.totalorder %v304_v8, %v3843_v10  ;;  %v344_v7 = vadd.s32 712, %v3827_v1  ;;  %v377_v8 = vadd.s32 976, %v3827_v1 }
  0x6a   : > { %3269 = vmatprep.subr.msk.mxu0 %vm479_vm12, %v3733_v17  ;;  %3333 = vmatprep.subr.msk.mxu1 %vm543_vm13, %v3733_v17  ;;  %vm471_vm12 = vcmp.eq.s32.totalorder %v271_v11, %v3841_v9  ;;  %vm535_vm13 = vcmp.eq.s32.totalorder %v303_v12, %v3841_v9 }
  0x6b   : > { %3270 = vmatpush2.msk.msra.mxu0 %vm478_vm14, %v3733_v17  ;;  %3334 = vmatpush2.msk.msra.mxu1 %vm542_vm15, %v3733_v17  ;;  %vm470_vm14 = vcmp.eq.s32.totalorder %v271_v11, %v3843_v10  ;;  %vm534_vm15 = vcmp.eq.s32.totalorder %v303_v12, %v3843_v10  ;;  %v1521_v11 = vld [vmem:[#allocation2 + $0x108] sm:$0xff]  ;;  %v1523_v12 = vld [vmem:[#allocation2 + $0x118] sm:$0xff] }
  0x6c   : > { %3271 = vmatprep.subr.msk.mxu0 %vm477_vm0, %v3733_v17  ;;  %3335 = vmatprep.subr.msk.mxu1 %vm541_vm1, %v3733_v17  ;;  %vm597_vm0 = vcmp.eq.s32.totalorder %v334_v13, %v3841_v9  ;;  %vm661_vm1 = vcmp.eq.s32.totalorder %v366_v14, %v3841_v9 }
  0x6d   : > { %3272 = vmatpush2.msk.msra.mxu0 %vm476_vm2, %v3733_v17  ;;  %3336 = vmatpush2.msk.msra.mxu1 %vm540_vm3, %v3733_v17  ;;  %vm596_vm2 = vcmp.eq.s32.totalorder %v334_v13, %v3843_v10  ;;  %vm660_vm3 = vcmp.eq.s32.totalorder %v366_v14, %v3843_v10  ;;  %v343_v13 = vadd.s32 704, %v3827_v1  ;;  %v376_v14 = vadd.s32 968, %v3827_v1 }
  0x6e   : > { %3273 = vmatprep.subr.msk.mxu0 %vm475_vm4, %v3733_v17  ;;  %3337 = vmatprep.subr.msk.mxu1 %vm539_vm5, %v3733_v17  ;;  %vm595_vm4 = vcmp.eq.s32.totalorder %v333_v15, %v3841_v9  ;;  %vm659_vm5 = vcmp.eq.s32.totalorder %v365_v16, %v3841_v9 }
  0x6f   : > { %3274 = vmatpush2.msk.msra.mxu0 %vm474_vm6, %v3733_v17  ;;  %3338 = vmatpush2.msk.msra.mxu1 %vm538_vm7, %v3733_v17  ;;  %vm594_vm6 = vcmp.eq.s32.totalorder %v333_v15, %v3843_v10  ;;  %vm658_vm7 = vcmp.eq.s32.totalorder %v365_v16, %v3843_v10  ;;  %v1533_v15 = vld [vmem:[#allocation2 + $0x168] sm:$0xff]  ;;  %v1535_v16 = vld [vmem:[#allocation2 + $0x178] sm:$0xff] }
  0x70   : > { %3275 = vmatprep.subr.msk.mxu0 %vm473_vm8, %v3733_v17  ;;  %3339 = vmatprep.subr.msk.mxu1 %vm537_vm9, %v3733_v17  ;;  %vm593_vm8 = vcmp.eq.s32.totalorder %v332_v20, %v3841_v9  ;;  %vm657_vm9 = vcmp.eq.s32.totalorder %v364_v21, %v3841_v9 }
  0x71   : > { %3276 = vmatpush2.msk.msra.mxu0 %vm472_vm10, %v3733_v17  ;;  %3340 = vmatpush2.msk.msra.mxu1 %vm536_vm11, %v3733_v17  ;;  %vm592_vm10 = vcmp.eq.s32.totalorder %v332_v20, %v3843_v10  ;;  %vm656_vm11 = vcmp.eq.s32.totalorder %v364_v21, %v3843_v10  ;;  %v1532_v20 = vld [vmem:[#allocation2 + $0x160] sm:$0xff]  ;;  %v1534_v21 = vld [vmem:[#allocation2 + $0x170] sm:$0xff] }
  0x72   : > { %3277 = vmatprep.subr.msk.mxu0 %vm471_vm12, %v3733_v17  ;;  %3341 = vmatprep.subr.msk.mxu1 %vm535_vm13, %v3733_v17  ;;  %vm591_vm12 = vcmp.eq.s32.totalorder %v331_v22, %v3841_v9  ;;  %vm655_vm13 = vcmp.eq.s32.totalorder %v363_v23, %v3841_v9 }
  0x73   : > { %3278 = vmatpush2.msk.msra.mxu0 %vm470_vm14, %v3733_v17  ;;  %3342 = vmatpush2.msk.msra.mxu1 %vm534_vm15, %v3733_v17  ;;  %vm590_vm14 = vcmp.eq.s32.totalorder %v331_v22, %v3843_v10  ;;  %vm654_vm15 = vcmp.eq.s32.totalorder %v363_v23, %v3843_v10  ;;  %v341_v22 = vadd.s32 688, %v3827_v1  ;;  %v374_v23 = vadd.s32 952, %v3827_v1 }
  0x74   : > { %1666 = vmatmul.mubr.f32.vlgmr.msra.gmra.mxu0 %v1488_v18  ;;  %1779 = vmatmul.mubr.f32.vlgmr.msra.gmra.mxu1 %v1490_v19  ;;  %v342_v18 = vadd.s32 696, %v3827_v1  ;;  %v375_v19 = vadd.s32 960, %v3827_v1 }
  0x75   : > { %3343 = vmatprep.subr.msk.mxu0 %vm597_vm0, %v3733_v17  ;;  %3407 = vmatprep.subr.msk.mxu1 %vm661_vm1, %v3733_v17  ;;  %vm589_vm0 = vcmp.eq.s32.totalorder %v330_v24, %v3841_v9  ;;  %vm653_vm1 = vcmp.eq.s32.totalorder %v362_v25, %v3841_v9 }
  0x76   : > { %3344 = vmatpush1.msk.msra.mxu0 %vm596_vm2, %v3733_v17  ;;  %3408 = vmatpush1.msk.msra.mxu1 %vm660_vm3, %v3733_v17  ;;  %vm588_vm2 = vcmp.eq.s32.totalorder %v330_v24, %v3843_v10  ;;  %vm652_vm3 = vcmp.eq.s32.totalorder %v362_v25, %v3843_v10  ;;  %v1544_v24 = vld [vmem:[#allocation2 + $0x1c0] sm:$0xff]  ;;  %v1546_v25 = vld [vmem:[#allocation2 + $0x1d0] sm:$0xff] }
  0x77   : > { %3345 = vmatprep.subr.msk.mxu0 %vm595_vm4, %v3733_v17  ;;  %3409 = vmatprep.subr.msk.mxu1 %vm659_vm5, %v3733_v17  ;;  %vm587_vm4 = vcmp.eq.s32.totalorder %v329_v26, %v3841_v9  ;;  %vm651_vm5 = vcmp.eq.s32.totalorder %v361_v27, %v3841_v9 }
  0x78   : > { %3346 = vmatpush1.msk.msra.mxu0 %vm594_vm6, %v3733_v17  ;;  %3410 = vmatpush1.msk.msra.mxu1 %vm658_vm7, %v3733_v17  ;;  %vm586_vm6 = vcmp.eq.s32.totalorder %v329_v26, %v3843_v10  ;;  %vm650_vm7 = vcmp.eq.s32.totalorder %v361_v27, %v3843_v10  ;;  %v340_v26 = vadd.s32 680, %v3827_v1  ;;  %v373_v27 = vadd.s32 944, %v3827_v1 }
  0x79   : > { %3347 = vmatprep.subr.msk.mxu0 %vm593_vm8, %v3733_v17  ;;  %3411 = vmatprep.subr.msk.mxu1 %vm657_vm9, %v3733_v17  ;;  %vm585_vm8 = vcmp.eq.s32.totalorder %v328_v28, %v3841_v9  ;;  %vm649_vm9 = vcmp.eq.s32.totalorder %v360_v29, %v3841_v9 }
  0x7a   : > { %3348 = vmatpush1.msk.msra.mxu0 %vm592_vm10, %v3733_v17  ;;  %3412 = vmatpush1.msk.msra.mxu1 %vm656_vm11, %v3733_v17  ;;  %vm584_vm10 = vcmp.eq.s32.totalorder %v328_v28, %v3843_v10  ;;  %vm648_vm11 = vcmp.eq.s32.totalorder %v360_v29, %v3843_v10  ;;  %v1543_v28 = vld [vmem:[#allocation2 + $0x1b8] sm:$0xff]  ;;  %v1545_v29 = vld [vmem:[#allocation2 + $0x1c8] sm:$0xff] }
  0x7b   : > { %3349 = vmatprep.subr.msk.mxu0 %vm591_vm12, %v3733_v17  ;;  %3413 = vmatprep.subr.msk.mxu1 %vm655_vm13, %v3733_v17  ;;  %vm583_vm12 = vcmp.eq.s32.totalorder %v327_v30, %v3841_v9  ;;  %vm647_vm13 = vcmp.eq.s32.totalorder %v359_v31, %v3841_v9 }
  0x7c   : > { %3350 = vmatpush1.msk.msra.mxu0 %vm590_vm14, %v3733_v17  ;;  %3414 = vmatpush1.msk.msra.mxu1 %vm654_vm15, %v3733_v17  ;;  %vm582_vm14 = vcmp.eq.s32.totalorder %v327_v30, %v3843_v10  ;;  %vm646_vm15 = vcmp.eq.s32.totalorder %v359_v31, %v3843_v10  ;;  %v339_v30 = vadd.s32 672, %v3827_v1  ;;  %v372_v31 = vadd.s32 936, %v3827_v1 }
  0x7d   : > { %3351 = vmatprep.subr.msk.mxu0 %vm589_vm0, %v3733_v17  ;;  %3415 = vmatprep.subr.msk.mxu1 %vm653_vm1, %v3733_v17  ;;  %vm581_vm0 = vcmp.eq.s32.totalorder %v326_v32, %v3841_v9  ;;  %vm645_vm1 = vcmp.eq.s32.totalorder %v358_v33, %v3841_v9 }
  0x7e   : > { %3352 = vmatpush1.msk.msra.mxu0 %vm588_vm2, %v3733_v17  ;;  %3416 = vmatpush1.msk.msra.mxu1 %vm652_vm3, %v3733_v17  ;;  %vm580_vm2 = vcmp.eq.s32.totalorder %v326_v32, %v3843_v10  ;;  %vm644_vm3 = vcmp.eq.s32.totalorder %v358_v33, %v3843_v10  ;;  %v1555_v32 = vld [vmem:[#allocation2 + $0x218] sm:$0xff]  ;;  %v1557_v33 = vld [vmem:[#allocation2 + $0x228] sm:$0xff] }
  0x7f   : > { %3353 = vmatprep.subr.msk.mxu0 %vm587_vm4, %v3733_v17  ;;  %3417 = vmatprep.subr.msk.mxu1 %vm651_vm5, %v3733_v17  ;;  %vm579_vm4 = vcmp.eq.s32.totalorder %v325_v34, %v3841_v9  ;;  %vm643_vm5 = vcmp.eq.s32.totalorder %v357_v35, %v3841_v9 }
  0x80   : > { %3354 = vmatpush1.msk.msra.mxu0 %vm586_vm6, %v3733_v17  ;;  %3418 = vmatpush1.msk.msra.mxu1 %vm650_vm7, %v3733_v17  ;;  %vm578_vm6 = vcmp.eq.s32.totalorder %v325_v34, %v3843_v10  ;;  %vm642_vm7 = vcmp.eq.s32.totalorder %v357_v35, %v3843_v10  ;;  %v338_v34 = vadd.s32 664, %v3827_v1  ;;  %v371_v35 = vadd.s32 928, %v3827_v1 }
  0x81   : > { %3355 = vmatprep.subr.msk.mxu0 %vm585_vm8, %v3733_v17  ;;  %3419 = vmatprep.subr.msk.mxu1 %vm649_vm9, %v3733_v17  ;;  %vm577_vm8 = vcmp.eq.s32.totalorder %v324_v36, %v3841_v9  ;;  %vm641_vm9 = vcmp.eq.s32.totalorder %v356_v37, %v3841_v9 }
  0x82   : > { %3356 = vmatpush1.msk.msra.mxu0 %vm584_vm10, %v3733_v17  ;;  %3420 = vmatpush1.msk.msra.mxu1 %vm648_vm11, %v3733_v17  ;;  %vm576_vm10 = vcmp.eq.s32.totalorder %v324_v36, %v3843_v10  ;;  %vm640_vm11 = vcmp.eq.s32.totalorder %v356_v37, %v3843_v10  ;;  %v1554_v36 = vld [vmem:[#allocation2 + $0x210] sm:$0xff]  ;;  %v1556_v37 = vld [vmem:[#allocation2 + $0x220] sm:$0xff] }
  0x83   : > { %3357 = vmatprep.subr.msk.mxu0 %vm583_vm12, %v3733_v17  ;;  %3421 = vmatprep.subr.msk.mxu1 %vm647_vm13, %v3733_v17  ;;  %vm575_vm12 = vcmp.eq.s32.totalorder %v323_v38, %v3841_v9  ;;  %vm639_vm13 = vcmp.eq.s32.totalorder %v355_v39, %v3841_v9 }
  0x84   : > { %3358 = vmatpush1.msk.msra.mxu0 %vm582_vm14, %v3733_v17  ;;  %3422 = vmatpush1.msk.msra.mxu1 %vm646_vm15, %v3733_v17  ;;  %vm574_vm14 = vcmp.eq.s32.totalorder %v323_v38, %v3843_v10  ;;  %vm638_vm15 = vcmp.eq.s32.totalorder %v355_v39, %v3843_v10  ;;  %v337_v38 = vadd.s32 656, %v3827_v1  ;;  %v370_v39 = vadd.s32 920, %v3827_v1 }
  0x85   : > { %3359 = vmatprep.subr.msk.mxu0 %vm581_vm0, %v3733_v17  ;;  %3423 = vmatprep.subr.msk.mxu1 %vm645_vm1, %v3733_v17  ;;  %vm573_vm0 = vcmp.eq.s32.totalorder %v322_v40, %v3841_v9  ;;  %vm637_vm1 = vcmp.eq.s32.totalorder %v354_v41, %v3841_v9 }
  0x86   : > { %3360 = vmatpush1.msk.msra.mxu0 %vm580_vm2, %v3733_v17  ;;  %3424 = vmatpush1.msk.msra.mxu1 %vm644_vm3, %v3733_v17  ;;  %vm572_vm2 = vcmp.eq.s32.totalorder %v322_v40, %v3843_v10  ;;  %vm636_vm3 = vcmp.eq.s32.totalorder %v354_v41, %v3843_v10  ;;  %v1566_v40 = vld [vmem:[#allocation2 + $0x270] sm:$0xff]  ;;  %v1568_v41 = vld [vmem:[#allocation2 + $0x280] sm:$0xff] }
  0x87   : > { %3361 = vmatprep.subr.msk.mxu0 %vm579_vm4, %v3733_v17  ;;  %3425 = vmatprep.subr.msk.mxu1 %vm643_vm5, %v3733_v17  ;;  %vm571_vm4 = vcmp.eq.s32.totalorder %v321_v42, %v3841_v9  ;;  %vm635_vm5 = vcmp.eq.s32.totalorder %v353_v43, %v3841_v9 }
  0x88   : > { %3362 = vmatpush1.msk.msra.mxu0 %vm578_vm6, %v3733_v17  ;;  %3426 = vmatpush1.msk.msra.mxu1 %vm642_vm7, %v3733_v17  ;;  %vm570_vm6 = vcmp.eq.s32.totalorder %v321_v42, %v3843_v10  ;;  %vm634_vm7 = vcmp.eq.s32.totalorder %v353_v43, %v3843_v10  ;;  %v336_v42 = vadd.s32 648, %v3827_v1  ;;  %v369_v43 = vadd.s32 912, %v3827_v1 }
  0x89   : > { %3363 = vmatprep.subr.msk.mxu0 %vm577_vm8, %v3733_v17  ;;  %3427 = vmatprep.subr.msk.mxu1 %vm641_vm9, %v3733_v17  ;;  %vm569_vm8 = vcmp.eq.s32.totalorder %v320_v44, %v3841_v9  ;;  %vm633_vm9 = vcmp.eq.s32.totalorder %v352_v45, %v3841_v9 }
  0x8a   : > { %3364 = vmatpush1.msk.msra.mxu0 %vm576_vm10, %v3733_v17  ;;  %3428 = vmatpush1.msk.msra.mxu1 %vm640_vm11, %v3733_v17  ;;  %vm568_vm10 = vcmp.eq.s32.totalorder %v320_v44, %v3843_v10  ;;  %vm632_vm11 = vcmp.eq.s32.totalorder %v352_v45, %v3843_v10  ;;  %v1565_v44 = vld [vmem:[#allocation2 + $0x268] sm:$0xff]  ;;  %v1567_v45 = vld [vmem:[#allocation2 + $0x278] sm:$0xff] }
  0x8b   : > { %3365 = vmatprep.subr.msk.mxu0 %vm575_vm12, %v3733_v17  ;;  %3429 = vmatprep.subr.msk.mxu1 %vm639_vm13, %v3733_v17  ;;  %vm567_vm12 = vcmp.eq.s32.totalorder %v319_v46, %v3841_v9  ;;  %vm631_vm13 = vcmp.eq.s32.totalorder %v351_v47, %v3841_v9 }
  0x8c   : > { %3366 = vmatpush1.msk.msra.mxu0 %vm574_vm14, %v3733_v17  ;;  %3430 = vmatpush1.msk.msra.mxu1 %vm638_vm15, %v3733_v17  ;;  %vm566_vm14 = vcmp.eq.s32.totalorder %v319_v46, %v3843_v10  ;;  %vm630_vm15 = vcmp.eq.s32.totalorder %v351_v47, %v3843_v10  ;;  %v335_v46 = vadd.s32 640, %v3827_v1  ;;  %v368_v47 = vadd.s32 904, %v3827_v1 }
  0x8d   : > { %3367 = vmatprep.subr.msk.mxu0 %vm573_vm0, %v3733_v17  ;;  %3431 = vmatprep.subr.msk.mxu1 %vm637_vm1, %v3733_v17  ;;  %vm629_vm0 = vcmp.eq.s32.totalorder %v350_v48, %v3841_v9  ;;  %vm628_vm1 = vcmp.eq.s32.totalorder %v350_v48, %v3843_v10  ;;  %v367_v48 = vadd.s32 896, %v3827_v1 }
  0x8e   : > { %3368 = vmatpush1.msk.msra.mxu0 %vm572_vm2, %v3733_v17  ;;  %3432 = vmatpush1.msk.msra.mxu1 %vm636_vm3, %v3733_v17  ;;  %vm627_vm2 = vcmp.eq.s32.totalorder %v349_v49, %v3841_v9  ;;  %vm693_vm3 = vcmp.eq.s32.totalorder %v382_v50, %v3841_v9 }
  0x8f   : > { %3369 = vmatprep.subr.msk.mxu0 %vm571_vm4, %v3733_v17  ;;  %3433 = vmatprep.subr.msk.mxu1 %vm635_vm5, %v3733_v17  ;;  %vm626_vm4 = vcmp.eq.s32.totalorder %v349_v49, %v3843_v10  ;;  %vm692_vm5 = vcmp.eq.s32.totalorder %v382_v50, %v3843_v10  ;;  %v398_v49 = vadd.s32 1144, %v3827_v1  ;;  %v1493_v50 = vld [vmem:[#allocation2 + $0x28] sm:$0xff] }
  0x90   : > { %3370 = vmatpush1.msk.msra.mxu0 %vm570_vm6, %v3733_v17  ;;  %3434 = vmatpush1.msk.msra.mxu1 %vm634_vm7, %v3733_v17  ;;  %vm625_vm6 = vcmp.eq.s32.totalorder %v348_v53, %v3841_v9  ;;  %vm691_vm7 = vcmp.eq.s32.totalorder %v381_v54, %v3841_v9 }
  0x91   : > { %3371 = vmatprep.subr.msk.mxu0 %vm569_vm8, %v3733_v17  ;;  %3435 = vmatprep.subr.msk.mxu1 %vm633_vm9, %v3733_v17  ;;  %vm624_vm8 = vcmp.eq.s32.totalorder %v348_v53, %v3843_v10  ;;  %vm690_vm9 = vcmp.eq.s32.totalorder %v381_v54, %v3843_v10  ;;  %v1495_v53 = vld [vmem:[#allocation2 + $0x38] sm:$0xff]  ;;  %v396_v54 = vadd.s32 1128, %v3827_v1 }
  0x92   : > { %3372 = vmatpush1.msk.msra.mxu0 %vm568_vm10, %v3733_v17  ;;  %3436 = vmatpush1.msk.msra.mxu1 %vm632_vm11, %v3733_v17  ;;  %vm623_vm10 = vcmp.eq.s32.totalorder %v347_v57, %v3841_v9  ;;  %vm689_vm11 = vcmp.eq.s32.totalorder %v380_v58, %v3841_v9 }
  0x93   : > { %3373 = vmatprep.subr.msk.mxu0 %vm567_vm12, %v3733_v17  ;;  %3437 = vmatprep.subr.msk.mxu1 %vm631_vm13, %v3733_v17  ;;  %vm622_vm12 = vcmp.eq.s32.totalorder %v347_v57, %v3843_v10  ;;  %vm688_vm13 = vcmp.eq.s32.totalorder %v380_v58, %v3843_v10  ;;  %v395_v57 = vadd.s32 1120, %v3827_v1  ;;  %v1506_v58 = vld [vmem:[#allocation2 + $0x90] sm:$0xff] }
  0x94   : > { %3374 = vmatpush1.msk.msra.mxu0 %vm566_vm14, %v3733_v17  ;;  %3438 = vmatpush1.msk.msra.mxu1 %vm630_vm15, %v3733_v17  ;;  %vm621_vm14 = vcmp.eq.s32.totalorder %v346_v61, %v3841_v9  ;;  %vm687_vm15 = vcmp.eq.s32.totalorder %v379_v62, %v3841_v9 }
  0x95   : > { %3375 = vmatprep.subr.msk.mxu0 %vm629_vm0, %v3733_v17  ;;  %1671 = vmatprep.mubr.f32.mxu0 %v1500_v51  ;;  %vm620_vm0 = vcmp.eq.s32.totalorder %v346_v61, %v3843_v10  ;;  %v1492_v51 = vld [vmem:[#allocation2 + $0x20] sm:$0xff]  ;;  %v1505_v61 = vld [vmem:[#allocation2 + $0x88] sm:$0xff] }
  0x96   : > { %3376 = vmatpush2.msk.msra.mxu0 %vm628_vm1, %v3733_v17  ;;  %1784 = vmatprep.mubr.f32.mxu1 %v1502_v52  ;;  %vm686_vm1 = vcmp.eq.s32.totalorder %v379_v62, %v3843_v10  ;;  %v397_v52 = vadd.s32 1136, %v3827_v1  ;;  %v1515_v62 = vld [vmem:[#allocation2 + $0xd8] sm:$0xff] }
  0x97   : > { %3377 = vmatprep.subr.msk.mxu0 %vm627_vm2, %v3733_v17  ;;  %3439 = vmatprep.subr.msk.mxu1 %vm693_vm3, %v3733_v17  ;;  %vm619_vm2 = vcmp.eq.s32.totalorder %v345_v3, %v3841_v9  ;;  %vm685_vm3 = vcmp.eq.s32.totalorder %v378_v4, %v3841_v9 }
  0x98   : > { %1672 = vmatmul.mubr.f32.gmra.mxu0 %v1499_v55  ;;  %1785 = vmatmul.mubr.f32.gmra.mxu1 %v1501_v56  ;;  %v1494_v55 = vld [vmem:[#allocation2 + $0x30] sm:$0xff]  ;;  %v1504_v56 = vld [vmem:[#allocation2 + $0x80] sm:$0xff] }
  0x99   : > { %3378 = vmatpush2.msk.msra.mxu0 %vm626_vm4, %v3733_v17  ;;  %3440 = vmatpush2.msk.msra.mxu1 %vm692_vm5, %v3733_v17  ;;  %vm618_vm4 = vcmp.eq.s32.totalorder %v345_v3, %v3843_v10  ;;  %vm684_vm5 = vcmp.eq.s32.totalorder %v378_v4, %v3843_v10  ;;  %v1514_v3 = vld [vmem:[#allocation2 + $0xd0] sm:$0xff]  ;;  %v392_v4 = vadd.s32 1096, %v3827_v1 }
  0x9a   : > { %3379 = vmatprep.subr.msk.mxu0 %vm625_vm6, %v3733_v17  ;;  %3441 = vmatprep.subr.msk.mxu1 %vm691_vm7, %v3733_v17  ;;  %vm617_vm6 = vcmp.eq.s32.totalorder %v344_v7, %v3841_v9  ;;  %vm683_vm7 = vcmp.eq.s32.totalorder %v377_v8, %v3841_v9 }
  0x9b   : > { %3380 = vmatpush2.msk.msra.mxu0 %vm624_vm8, %v3733_v17  ;;  %3442 = vmatpush2.msk.msra.mxu1 %vm690_vm9, %v3733_v17  ;;  %vm616_vm8 = vcmp.eq.s32.totalorder %v344_v7, %v3843_v10  ;;  %vm682_vm9 = vcmp.eq.s32.totalorder %v377_v8, %v3843_v10  ;;  %v391_v7 = vadd.s32 1088, %v3827_v1  ;;  %v1528_v8 = vld [vmem:[#allocation2 + $0x140] sm:$0xff] }
  0x9c   : > { %1677 = vmatprep.mubr.f32.mxu0 %v1511_v59  ;;  %1790 = vmatprep.mubr.f32.mxu1 %v1513_v60  ;;  %v1503_v59 = vld [vmem:[#allocation2 + $0x78] sm:$0xff]  ;;  %v394_v60 = vadd.s32 1112, %v3827_v1 }
  0x9d   : > { %3381 = vmatprep.subr.msk.mxu0 %vm623_vm10, %v3733_v17  ;;  %3443 = vmatprep.subr.msk.mxu1 %vm689_vm11, %v3733_v17  ;;  %vm615_vm10 = vcmp.eq.s32.totalorder %v343_v13, %v3841_v9  ;;  %vm681_vm11 = vcmp.eq.s32.totalorder %v376_v14, %v3841_v9 }
  0x9e   : > { %1678 = vmatmul.mubr.f32.gmra.mxu0 %v1510_v63  ;;  %1791 = vmatmul.mubr.f32.gmra.mxu1 %v1512_v2  ;;  %v393_v63 = vadd.s32 1104, %v3827_v1  ;;  %v1517_v2 = vld [vmem:[#allocation2 + $0xe8] sm:$0xff] }
  0x9f   : > { %3382 = vmatpush2.msk.msra.mxu0 %vm622_vm12, %v3733_v17  ;;  %3444 = vmatpush2.msk.msra.mxu1 %vm688_vm13, %v3733_v17  ;;  %vm614_vm12 = vcmp.eq.s32.totalorder %v343_v13, %v3843_v10  ;;  %vm680_vm13 = vcmp.eq.s32.totalorder %v376_v14, %v3843_v10  ;;  %v1527_v13 = vld [vmem:[#allocation2 + $0x138] sm:$0xff]  ;;  %v1537_v14 = vld [vmem:[#allocation2 + $0x188] sm:$0xff] }
  0xa0   : > { %3383 = vmatprep.subr.msk.mxu0 %vm621_vm14, %v3733_v17  ;;  %3445 = vmatprep.subr.msk.mxu1 %vm687_vm15, %v3733_v17  ;;  %vm613_vm14 = vcmp.eq.s32.totalorder %v342_v18, %v3841_v9  ;;  %vm679_vm15 = vcmp.eq.s32.totalorder %v375_v19, %v3841_v9 }
  0xa1   : > { %3384 = vmatpush2.msk.msra.mxu0 %vm620_vm0, %v3733_v17  ;;  %3446 = vmatpush2.msk.msra.mxu1 %vm686_vm1, %v3733_v17  ;;  %vm612_vm0 = vcmp.eq.s32.totalorder %v342_v18, %v3843_v10  ;;  %vm678_vm1 = vcmp.eq.s32.totalorder %v375_v19, %v3843_v10  ;;  %v1536_v18 = vld [vmem:[#allocation2 + $0x180] sm:$0xff]  ;;  %v388_v19 = vadd.s32 1064, %v3827_v1 }
  0xa2   : > { %1683 = vmatprep.mubr.f32.mxu0 %v1522_v5  ;;  %1796 = vmatprep.mubr.f32.mxu1 %v1524_v6  ;;  %v1516_v5 = vld [vmem:[#allocation2 + $0xe0] sm:$0xff]  ;;  %v1526_v6 = vld [vmem:[#allocation2 + $0x130] sm:$0xff] }
  0xa3   : > { %3385 = vmatprep.subr.msk.mxu0 %vm619_vm2, %v3733_v17  ;;  %3447 = vmatprep.subr.msk.mxu1 %vm685_vm3, %v3733_v17  ;;  %vm611_vm2 = vcmp.eq.s32.totalorder %v341_v22, %v3841_v9  ;;  %vm677_vm3 = vcmp.eq.s32.totalorder %v374_v23, %v3841_v9 }
  0xa4   : > { %1684 = vmatmul.mubr.f32.gmra.mxu0 %v1521_v11  ;;  %1797 = vmatmul.mubr.f32.gmra.mxu1 %v1523_v12  ;;  %v1525_v11 = vld [vmem:[#allocation2 + $0x128] sm:$0xff]  ;;  %v390_v12 = vadd.s32 1080, %v3827_v1 }
  0xa5   : > { %3386 = vmatpush2.msk.msra.mxu0 %vm618_vm4, %v3733_v17  ;;  %3448 = vmatpush2.msk.msra.mxu1 %vm684_vm5, %v3733_v17  ;;  %vm610_vm4 = vcmp.eq.s32.totalorder %v341_v22, %v3843_v10  ;;  %vm676_vm5 = vcmp.eq.s32.totalorder %v374_v23, %v3843_v10  ;;  %v387_v22 = vadd.s32 1056, %v3827_v1  ;;  %v1550_v23 = vld [vmem:[#allocation2 + $0x1f0] sm:$0xff] }
  0xa6   : > { %3387 = vmatprep.subr.msk.mxu0 %vm617_vm6, %v3733_v17  ;;  %3449 = vmatprep.subr.msk.mxu1 %vm683_vm7, %v3733_v17  ;;  %vm609_vm6 = vcmp.eq.s32.totalorder %v340_v26, %v3841_v9  ;;  %vm675_vm7 = vcmp.eq.s32.totalorder %v373_v27, %v3841_v9 }
  0xa7   : > { %3388 = vmatpush2.msk.msra.mxu0 %vm616_vm8, %v3733_v17  ;;  %3450 = vmatpush2.msk.msra.mxu1 %vm682_vm9, %v3733_v17  ;;  %vm608_vm8 = vcmp.eq.s32.totalorder %v340_v26, %v3843_v10  ;;  %vm674_vm9 = vcmp.eq.s32.totalorder %v373_v27, %v3843_v10  ;;  %v1549_v26 = vld [vmem:[#allocation2 + $0x1e8] sm:$0xff]  ;;  %v1559_v27 = vld [vmem:[#allocation2 + $0x238] sm:$0xff] }
  0xa8   : > { %1689 = vmatprep.mubr.f32.mxu0 %v1533_v15  ;;  %1802 = vmatprep.mubr.f32.mxu1 %v1535_v16  ;;  %v389_v15 = vadd.s32 1072, %v3827_v1  ;;  %v1539_v16 = vld [vmem:[#allocation2 + $0x198] sm:$0xff] }
  0xa9   : > { %3389 = vmatprep.subr.msk.mxu0 %vm615_vm10, %v3733_v17  ;;  %3451 = vmatprep.subr.msk.mxu1 %vm681_vm11, %v3733_v17  ;;  %vm607_vm10 = vcmp.eq.s32.totalorder %v339_v30, %v3841_v9  ;;  %vm673_vm11 = vcmp.eq.s32.totalorder %v372_v31, %v3841_v9 }
  0xaa   : > { %1690 = vmatmul.mubr.f32.gmra.mxu0 %v1532_v20  ;;  %1803 = vmatmul.mubr.f32.gmra.mxu1 %v1534_v21  ;;  %v1538_v20 = vld [vmem:[#allocation2 + $0x190] sm:$0xff]  ;;  %v1548_v21 = vld [vmem:[#allocation2 + $0x1e0] sm:$0xff] }
  0xab   : > { %3390 = vmatpush2.msk.msra.mxu0 %vm614_vm12, %v3733_v17  ;;  %3452 = vmatpush2.msk.msra.mxu1 %vm680_vm13, %v3733_v17  ;;  %vm606_vm12 = vcmp.eq.s32.totalorder %v339_v30, %v3843_v10  ;;  %vm672_vm13 = vcmp.eq.s32.totalorder %v372_v31, %v3843_v10  ;;  %v1558_v30 = vld [vmem:[#allocation2 + $0x230] sm:$0xff]  ;;  %v384_v31 = vadd.s32 1032, %v3827_v1 }
  0xac   : > { %3391 = vmatprep.subr.msk.mxu0 %vm613_vm14, %v3733_v17  ;;  %3453 = vmatprep.subr.msk.mxu1 %vm679_vm15, %v3733_v17  ;;  %vm605_vm14 = vcmp.eq.s32.totalorder %v338_v34, %v3841_v9  ;;  %vm671_vm15 = vcmp.eq.s32.totalorder %v371_v35, %v3841_v9 }
  0xad   : > { %3392 = vmatpush2.msk.msra.mxu0 %vm612_vm0, %v3733_v17  ;;  %3454 = vmatpush2.msk.msra.mxu1 %vm678_vm1, %v3733_v17  ;;  %vm604_vm0 = vcmp.eq.s32.totalorder %v338_v34, %v3843_v10  ;;  %vm670_vm1 = vcmp.eq.s32.totalorder %v371_v35, %v3843_v10  ;;  %v383_v34 = vadd.s32 1024, %v3827_v1  ;;  %v429_v35 = vadd.s32 1392, %v3827_v1 }
  0xae   : > { %1695 = vmatprep.mubr.f32.mxu0 %v1544_v24  ;;  %1808 = vmatprep.mubr.f32.mxu1 %v1546_v25  ;;  %v1547_v24 = vld [vmem:[#allocation2 + $0x1d8] sm:$0xff]  ;;  %v386_v25 = vadd.s32 1048, %v3827_v1 }
  0xaf   : > { %3393 = vmatprep.subr.msk.mxu0 %vm611_vm2, %v3733_v17  ;;  %3455 = vmatprep.subr.msk.mxu1 %vm677_vm3, %v3733_v17  ;;  %vm603_vm2 = vcmp.eq.s32.totalorder %v337_v38, %v3841_v9  ;;  %vm669_vm3 = vcmp.eq.s32.totalorder %v370_v39, %v3841_v9 }
  0xb0   : > { %1696 = vmatmul.mubr.f32.gmra.mxu0 %v1543_v28  ;;  %1809 = vmatmul.mubr.f32.gmra.mxu1 %v1545_v29  ;;  %v385_v28 = vadd.s32 1040, %v3827_v1  ;;  %v1561_v29 = vld [vmem:[#allocation2 + $0x248] sm:$0xff] }
  0xb1   : > { %3394 = vmatpush2.msk.msra.mxu0 %vm610_vm4, %v3733_v17  ;;  %3456 = vmatpush2.msk.msra.mxu1 %vm676_vm5, %v3733_v17  ;;  %vm602_vm4 = vcmp.eq.s32.totalorder %v337_v38, %v3843_v10  ;;  %vm668_vm5 = vcmp.eq.s32.totalorder %v370_v39, %v3843_v10  ;;  %v414_v38 = vadd.s32 1272, %v3827_v1  ;;  %v428_v39 = vadd.s32 1384, %v3827_v1 }
  0xb2   : > { %3395 = vmatprep.subr.msk.mxu0 %vm609_vm6, %v3733_v17  ;;  %3457 = vmatprep.subr.msk.mxu1 %vm675_vm7, %v3733_v17  ;;  %vm601_vm6 = vcmp.eq.s32.totalorder %v336_v42, %v3841_v9  ;;  %vm667_vm7 = vcmp.eq.s32.totalorder %v369_v43, %v3841_v9 }
  0xb3   : > { %3396 = vmatpush2.msk.msra.mxu0 %vm608_vm8, %v3733_v17  ;;  %3458 = vmatpush2.msk.msra.mxu1 %vm674_vm9, %v3733_v17  ;;  %vm600_vm8 = vcmp.eq.s32.totalorder %v336_v42, %v3843_v10  ;;  %vm666_vm9 = vcmp.eq.s32.totalorder %v369_v43, %v3843_v10  ;;  %v427_v42 = vadd.s32 1376, %v3827_v1  ;;  %v412_v43 = vadd.s32 1256, %v3827_v1 }
  0xb4   : > { %1701 = vmatprep.mubr.f32.mxu0 %v1555_v32  ;;  %1814 = vmatprep.mubr.f32.mxu1 %v1557_v33  ;;  %v1560_v32 = vld [vmem:[#allocation2 + $0x240] sm:$0xff]  ;;  %v1570_v33 = vld [vmem:[#allocation2 + $0x290] sm:$0xff] }
  0xb5   : > { %3397 = vmatprep.subr.msk.mxu0 %vm607_vm10, %v3733_v17  ;;  %3459 = vmatprep.subr.msk.mxu1 %vm673_vm11, %v3733_v17  ;;  %vm599_vm10 = vcmp.eq.s32.totalorder %v335_v46, %v3841_v9  ;;  %vm665_vm11 = vcmp.eq.s32.totalorder %v368_v47, %v3841_v9 }
  0xb6   : > { %1702 = vmatmul.mubr.f32.gmra.mxu0 %v1554_v36  ;;  %1815 = vmatmul.mubr.f32.gmra.mxu1 %v1556_v37  ;;  %v1572_v36 = vld [vmem:[#allocation2 + $0x2a0] sm:$0xff]  ;;  %v1569_v37 = vld [vmem:[#allocation2 + $0x288] sm:$0xff] }
  0xb7   : > { %3398 = vmatpush2.msk.msra.mxu0 %vm606_vm12, %v3733_v17  ;;  %3460 = vmatpush2.msk.msra.mxu1 %vm672_vm13, %v3733_v17  ;;  %vm598_vm12 = vcmp.eq.s32.totalorder %v335_v46, %v3843_v10  ;;  %vm664_vm13 = vcmp.eq.s32.totalorder %v368_v47, %v3843_v10  ;;  %v425_v46 = vadd.s32 1360, %v3827_v1  ;;  %v410_v47 = vadd.s32 1240, %v3827_v1 }
  0xb8   : > { %3399 = vmatprep.subr.msk.mxu0 %vm605_vm14, %v3733_v17  ;;  %3461 = vmatprep.subr.msk.mxu1 %vm671_vm15, %v3733_v17  ;;  %vm663_vm14 = vcmp.eq.s32.totalorder %v367_v48, %v3841_v9  ;;  %vm725_vm15 = vcmp.eq.s32.totalorder %v398_v49, %v3841_v9 }
  0xb9   : > { %3400 = vmatpush2.msk.msra.mxu0 %vm604_vm0, %v3733_v17  ;;  %3462 = vmatpush2.msk.msra.mxu1 %vm670_vm1, %v3733_v17  ;;  %vm662_vm0 = vcmp.eq.s32.totalorder %v367_v48, %v3843_v10  ;;  %vm724_vm1 = vcmp.eq.s32.totalorder %v398_v49, %v3843_v10  ;;  %v424_v48 = vadd.s32 1352, %v3827_v1  ;;  %v409_v49 = vadd.s32 1232, %v3827_v1 }
  0xba   : > { %1707 = vmatprep.mubr.f32.mxu0 %v1566_v40  ;;  %1820 = vmatprep.mubr.f32.mxu1 %v1568_v41  ;;  %v1571_v40 = vld [vmem:[#allocation2 + $0x298] sm:$0xff]  ;;  %v413_v41 = vadd.s32 1264, %v3827_v1 }
  0xbb   : > { %3401 = vmatprep.subr.msk.mxu0 %vm603_vm2, %v3733_v17  ;;  %3463 = vmatprep.subr.msk.mxu1 %vm669_vm3, %v3733_v17  ;;  %vm723_vm2 = vcmp.eq.s32.totalorder %v397_v52, %v3841_v9  ;;  %vm722_vm3 = vcmp.eq.s32.totalorder %v397_v52, %v3843_v10  ;;  %v422_v52 = vadd.s32 1336, %v3827_v1 }
  0xbc   : > { %1708 = vmatmul.mubr.f32.gmra.mxu0 %v1565_v44  ;;  %1821 = vmatmul.mubr.f32.gmra.mxu1 %v1567_v45  ;;  %v426_v44 = vadd.s32 1368, %v3827_v1  ;;  %v411_v45 = vadd.s32 1248, %v3827_v1 }
  0xbd   : > { %3402 = vmatpush2.msk.msra.mxu0 %vm602_vm4, %v3733_v17  ;;  %3464 = vmatpush2.msk.msra.mxu1 %vm668_vm5, %v3733_v17  ;;  %vm721_vm4 = vcmp.eq.s32.totalorder %v396_v54, %v3841_v9  ;;  %vm720_vm5 = vcmp.eq.s32.totalorder %v396_v54, %v3843_v10  ;;  %v421_v54 = vadd.s32 1328, %v3827_v1 }
  0xbe   : > { %3403 = vmatprep.subr.msk.mxu0 %vm601_vm6, %v3733_v17  ;;  %3465 = vmatprep.subr.msk.mxu1 %vm667_vm7, %v3733_v17  ;;  %vm719_vm6 = vcmp.eq.s32.totalorder %v395_v57, %v3841_v9  ;;  %vm718_vm7 = vcmp.eq.s32.totalorder %v395_v57, %v3843_v10  ;;  %v405_v57 = vadd.s32 1200, %v3827_v1 }
  0xbf   : > { %3404 = vmatpush2.msk.msra.mxu0 %vm600_vm8, %v3733_v17  ;;  %3466 = vmatpush2.msk.msra.mxu1 %vm666_vm9, %v3733_v17  ;;  %vm717_vm8 = vcmp.eq.s32.totalorder %v394_v60, %v3841_v9  ;;  %vm716_vm9 = vcmp.eq.s32.totalorder %v394_v60, %v3843_v10  ;;  %v418_v60 = vadd.s32 1304, %v3827_v1 }
  0xc0   : > { %3405 = vmatprep.subr.msk.mxu0 %vm599_vm10, %v3733_v17  ;;  %3467 = vmatprep.subr.msk.mxu1 %vm665_vm11, %v3733_v17  ;;  %vm715_vm10 = vcmp.eq.s32.totalorder %v393_v63, %v3841_v9  ;;  %vm714_vm11 = vcmp.eq.s32.totalorder %v393_v63, %v3843_v10  ;;  %v402_v63 = vadd.s32 1176, %v3827_v1 }
  0xc1   : > { %3406 = vmatpush2.msk.msra.mxu0 %vm598_vm12, %v3733_v17  ;;  %1891 = vmatprep.mubr.f32.mxu0 %v1493_v50  ;;  %vm713_vm12 = vcmp.eq.s32.totalorder %v392_v4, %v3841_v9  ;;  %v423_v50 = vadd.s32 1344, %v3827_v1 }
  0xc2   : > { %3468 = vmatpush2.msk.msra.mxu1 %vm664_vm13, %v3733_v17  ;;  %1892 = vmatmul.mubr.f32.vlgmr.msra.gmra.mxu0 %v1492_v51  ;;  %vm712_vm13 = vcmp.eq.s32.totalorder %v392_v4, %v3843_v10  ;;  %v408_v51 = vadd.s32 1224, %v3827_v1  ;;  %v415_v4 = vadd.s32 1280, %v3827_v1 }
  0xc3   : > { %3469 = vmatprep.subr.msk.mxu1 %vm663_vm14, %v3733_v17  ;;  %3471 = vmatprep.subr.msk.mxu0 %vm725_vm15, %v3733_v17  ;;  %vm711_vm14 = vcmp.eq.s32.totalorder %v391_v7, %v3841_v9  ;;  %vm710_vm15 = vcmp.eq.s32.totalorder %v391_v7, %v3843_v10  ;;  %v1497_v7 = vld [vmem:[#allocation2 + $0x48] sm:$0xff] }
  0xc4   : > { %3470 = vmatpush2.msk.msra.mxu1 %vm662_vm0, %v3733_v17  ;;  %2004 = vmatprep.mubr.f32.mxu1 %v1495_v53  ;;  %vm709_vm0 = vcmp.eq.s32.totalorder %v390_v12, %v3841_v9  ;;  %v407_v53 = vadd.s32 1216, %v3827_v1 }
  0xc5   : > { %3472 = vmatpush1.msk.msra.mxu0 %vm724_vm1, %v3733_v17  ;;  %2005 = vmatmul.mubr.f32.vlgmr.msra.gmra.mxu1 %v1494_v55  ;;  %vm708_vm1 = vcmp.eq.s32.totalorder %v390_v12, %v3843_v10  ;;  %v406_v55 = vadd.s32 1208, %v3827_v1  ;;  %v1496_v12 = vld [vmem:[#allocation2 + $0x40] sm:$0xff] }
  0xc6   : > { %3473 = vmatprep.subr.msk.mxu0 %vm723_vm2, %v3733_v17  ;;  %1897 = vmatprep.mubr.f32.mxu0 %v1504_v56  ;;  %vm707_vm2 = vcmp.eq.s32.totalorder %v389_v15, %v3841_v9  ;;  %v420_v56 = vadd.s32 1320, %v3827_v1 }
  0xc7   : > { %3474 = vmatpush1.msk.msra.mxu0 %vm722_vm3, %v3733_v17  ;;  %2010 = vmatprep.mubr.f32.mxu1 %v1506_v58  ;;  %vm706_vm3 = vcmp.eq.s32.totalorder %v389_v15, %v3843_v10  ;;  %v419_v58 = vadd.s32 1312, %v3827_v1  ;;  %v1520_v15 = vld [vmem:[#allocation2 + $0x100] sm:$0xff] }
  0xc8   : > { %1898 = vmatmul.mubr.f32.gmra.mxu0 %v1503_v59  ;;  %3475 = vmatprep.subr.msk.mxu0 %vm721_vm4, %v3733_v17  ;;  %vm705_vm4 = vcmp.eq.s32.totalorder %v388_v19, %v3841_v9  ;;  %v404_v59 = vadd.s32 1192, %v3827_v1 }
  0xc9   : > { %3476 = vmatpush1.msk.msra.mxu0 %vm720_vm5, %v3733_v17  ;;  %2011 = vmatmul.mubr.f32.gmra.mxu1 %v1505_v61  ;;  %vm704_vm5 = vcmp.eq.s32.totalorder %v388_v19, %v3843_v10  ;;  %v403_v61 = vadd.s32 1184, %v3827_v1  ;;  %v1529_v19 = vld [vmem:[#allocation2 + $0x148] sm:$0xff] }
  0xca   : > { %3477 = vmatprep.subr.msk.mxu0 %vm719_vm6, %v3733_v17  ;;  %1903 = vmatprep.mubr.f32.mxu0 %v1515_v62  ;;  %vm703_vm6 = vcmp.eq.s32.totalorder %v387_v22, %v3841_v9  ;;  %v417_v62 = vadd.s32 1296, %v3827_v1 }
  0xcb   : > { %3478 = vmatpush1.msk.msra.mxu0 %vm718_vm7, %v3733_v17  ;;  %2016 = vmatprep.mubr.f32.mxu1 %v1517_v2  ;;  %vm702_vm7 = vcmp.eq.s32.totalorder %v387_v22, %v3843_v10  ;;  %v416_v2 = vadd.s32 1288, %v3827_v1  ;;  %v1540_v22 = vld [vmem:[#allocation2 + $0x1a0] sm:$0xff] }
  0xcc   : > { %1904 = vmatmul.mubr.f32.gmra.mxu0 %v1514_v3  ;;  %3479 = vmatprep.subr.msk.mxu0 %vm717_vm8, %v3733_v17  ;;  %vm701_vm8 = vcmp.eq.s32.totalorder %v386_v25, %v3841_v9  ;;  %v401_v3 = vadd.s32 1168, %v3827_v1 }
  0xcd   : > { %3480 = vmatpush1.msk.msra.mxu0 %vm716_vm9, %v3733_v17  ;;  %2017 = vmatmul.mubr.f32.gmra.mxu1 %v1516_v5  ;;  %vm700_vm9 = vcmp.eq.s32.totalorder %v386_v25, %v3843_v10  ;;  %v400_v5 = vadd.s32 1160, %v3827_v1  ;;  %v1551_v25 = vld [vmem:[#allocation2 + $0x1f8] sm:$0xff] }
  0xce   : > { %3481 = vmatprep.subr.msk.mxu0 %vm715_vm10, %v3733_v17  ;;  %1909 = vmatprep.mubr.f32.mxu0 %v1526_v6  ;;  %vm699_vm10 = vcmp.eq.s32.totalorder %v385_v28, %v3841_v9  ;;  %v399_v6 = vadd.s32 1152, %v3827_v1 }
  0xcf   : > { %3482 = vmatpush1.msk.msra.mxu0 %vm714_vm11, %v3733_v17  ;;  %2022 = vmatprep.mubr.f32.mxu1 %v1528_v8  ;;  %vm698_vm11 = vcmp.eq.s32.totalorder %v385_v28, %v3843_v10  ;;  %v1498_v8 = vld [vmem:[#allocation2 + $0x50] sm:$0xff] }
  0xd0   : > { %1910 = vmatmul.mubr.f32.gmra.mxu0 %v1525_v11  ;;  %3483 = vmatprep.subr.msk.mxu0 %vm713_vm12, %v3733_v17  ;;  %vm697_vm12 = vcmp.eq.s32.totalorder %v384_v31, %v3841_v9  ;;  %v5018_v11 = vmov 0.0   ;;  %v1562_v28 = vld [vmem:[#allocation2 + $0x250] sm:$0xff] }
  0xd1   : > { %3484 = vmatpush1.msk.msra.mxu0 %vm712_vm13, %v3733_v17  ;;  %2023 = vmatmul.mubr.f32.gmra.mxu1 %v1527_v13  ;;  %vm696_vm13 = vcmp.eq.s32.totalorder %v384_v31, %v3843_v10  ;;  %v1509_v13 = vld [vmem:[#allocation2 + $0xa8] sm:$0xff] }
  0xd2   : > { %3485 = vmatprep.subr.msk.mxu0 %vm711_vm14, %v3733_v17  ;;  %1915 = vmatprep.mubr.f32.mxu0 %v1537_v14  ;;  %vm695_vm14 = vcmp.eq.s32.totalorder %v383_v34, %v3841_v9  ;;  %v1519_v14 = vld [vmem:[#allocation2 + $0xf8] sm:$0xff]  ;;  %v1573_v31 = vld [vmem:[#allocation2 + $0x2a8] sm:$0xff] }
  0xd3   : > { %3486 = vmatpush1.msk.msra.mxu0 %vm710_vm15, %v3733_v17  ;;  %2028 = vmatprep.mubr.f32.mxu1 %v1539_v16  ;;  %vm787_vm15 = vcmp.eq.s32.totalorder %v429_v35, %v3841_v9  ;;  %v1518_v16 = vld [vmem:[#allocation2 + $0xf0] sm:$0xff] }
  0xd4   : > { %1916 = vmatmul.mubr.f32.gmra.mxu0 %v1536_v18  ;;  %3487 = vmatprep.subr.msk.mxu0 %vm709_vm0, %v3733_v17  ;;  %vm694_vm0 = vcmp.eq.s32.totalorder %v383_v34, %v3843_v10  ;;  %v1530_v18 = vld [vmem:[#allocation2 + $0x150] sm:$0xff] }
  0xd5   : > { %3488 = vmatpush1.msk.msra.mxu0 %vm708_vm1, %v3733_v17  ;;  %2029 = vmatmul.mubr.f32.gmra.mxu1 %v1538_v20  ;;  %vm786_vm1 = vcmp.eq.s32.totalorder %v429_v35, %v3843_v10  ;;  %v1541_v20 = vld [vmem:[#allocation2 + $0x1a8] sm:$0xff] }
  0xd6   : > { %3489 = vmatprep.subr.msk.mxu0 %vm707_vm2, %v3733_v17  ;;  %1921 = vmatprep.mubr.f32.mxu0 %v1548_v21  ;;  %vm757_vm2 = vcmp.eq.s32.totalorder %v414_v38, %v3841_v9  ;;  %v1542_v21 = vld [vmem:[#allocation2 + $0x1b0] sm:$0xff] }
  0xd7   : > { %3490 = vmatpush1.msk.msra.mxu0 %vm706_vm3, %v3733_v17  ;;  %2034 = vmatprep.mubr.f32.mxu1 %v1550_v23  ;;  %vm785_vm3 = vcmp.eq.s32.totalorder %v428_v39, %v3841_v9  ;;  %v1552_v23 = vld [vmem:[#allocation2 + $0x200] sm:$0xff] }
  0xd8   : > { %1922 = vmatmul.mubr.f32.gmra.mxu0 %v1547_v24  ;;  %3491 = vmatprep.subr.msk.mxu0 %vm705_vm4, %v3733_v17  ;;  %vm756_vm4 = vcmp.eq.s32.totalorder %v414_v38, %v3843_v10  ;;  %v1553_v24 = vld [vmem:[#allocation2 + $0x208] sm:$0xff] }
  0xd9   : > { %3492 = vmatpush1.msk.msra.mxu0 %vm704_vm5, %v3733_v17  ;;  %2035 = vmatmul.mubr.f32.gmra.mxu1 %v1549_v26  ;;  %vm784_vm5 = vcmp.eq.s32.totalorder %v428_v39, %v3843_v10  ;;  %v1563_v26 = vld [vmem:[#allocation2 + $0x258] sm:$0xff] }
  0xda   : > { %3493 = vmatprep.subr.msk.mxu0 %vm703_vm6, %v3733_v17  ;;  %1927 = vmatprep.mubr.f32.mxu0 %v1559_v27  ;;  %vm755_vm6 = vcmp.eq.s32.totalorder %v413_v41, %v3841_v9  ;;  %v1564_v27 = vld [vmem:[#allocation2 + $0x260] sm:$0xff] }
  0xdb   : > { %3494 = vmatpush1.msk.msra.mxu0 %vm702_vm7, %v3733_v17  ;;  %2040 = vmatprep.mubr.f32.mxu1 %v1561_v29  ;;  %vm783_vm7 = vcmp.eq.s32.totalorder %v427_v42, %v3841_v9  ;;  %v1574_v29 = vld [vmem:[#allocation2 + $0x2b0] sm:$0xff] }
  0xdc   : > { %1928 = vmatmul.mubr.f32.gmra.mxu0 %v1558_v30  ;;  %3495 = vmatprep.subr.msk.mxu0 %vm701_vm8, %v3733_v17  ;;  %vm754_vm8 = vcmp.eq.s32.totalorder %v413_v41, %v3843_v10  ;;  %v1575_v30 = vld [vmem:[#allocation2 + $0x2b8] sm:$0xff] }
  0xdd   : > { %3496 = vmatpush1.msk.msra.mxu0 %vm700_vm9, %v3733_v17  ;;  %2041 = vmatmul.mubr.f32.gmra.mxu1 %v1560_v32  ;;  %vm782_vm9 = vcmp.eq.s32.totalorder %v427_v42, %v3843_v10 }
  0xde   : > { %3497 = vmatprep.subr.msk.mxu0 %vm699_vm10, %v3733_v17  ;;  %1933 = vmatprep.mubr.f32.mxu0 %v1570_v33  ;;  %vm753_vm10 = vcmp.eq.s32.totalorder %v412_v43, %v3841_v9 }
  0xdf   : > { %3498 = vmatpush1.msk.msra.mxu0 %vm698_vm11, %v3733_v17  ;;  %2046 = vmatprep.mubr.f32.mxu1 %v1572_v36  ;;  %vm781_vm11 = vcmp.eq.s32.totalorder %v426_v44, %v3841_v9 }
  0xe0   : > { %1934 = vmatmul.mubr.f32.gmra.mxu0 %v1569_v37  ;;  %3499 = vmatprep.subr.msk.mxu0 %vm697_vm12, %v3733_v17  ;;  %vm752_vm12 = vcmp.eq.s32.totalorder %v412_v43, %v3843_v10 }
  0xe1   : > { %3500 = vmatpush1.msk.msra.mxu0 %vm696_vm13, %v3733_v17  ;;  %2047 = vmatmul.mubr.f32.gmra.mxu1 %v1571_v40  ;;  %vm780_vm13 = vcmp.eq.s32.totalorder %v426_v44, %v3843_v10 }
  0xe2   : > { %3501 = vmatprep.subr.msk.mxu0 %vm695_vm14, %v3733_v17  ;;  %3535 = vmatprep.subr.msk.mxu1 %vm787_vm15, %v3733_v17  ;;  %vm751_vm14 = vcmp.eq.s32.totalorder %v411_v45, %v3841_v9  ;;  %vm779_vm15 = vcmp.eq.s32.totalorder %v425_v46, %v3841_v9 }
  0xe3   : > { %3502 = vmatpush1.msk.msra.mxu0 %vm694_vm0, %v3733_v17  ;;  %3536 = vmatpush1.msk.msra.mxu1 %vm786_vm1, %v3733_v17  ;;  %vm750_vm0 = vcmp.eq.s32.totalorder %v411_v45, %v3843_v10  ;;  %vm778_vm1 = vcmp.eq.s32.totalorder %v425_v46, %v3843_v10 }
  0xe4   : > { %3503 = vmatprep.subr.msk.mxu0 %vm757_vm2, %v3733_v17  ;;  %3537 = vmatprep.subr.msk.mxu1 %vm785_vm3, %v3733_v17  ;;  %vm749_vm2 = vcmp.eq.s32.totalorder %v410_v47, %v3841_v9  ;;  %vm777_vm3 = vcmp.eq.s32.totalorder %v424_v48, %v3841_v9 }
  0xe5   : > { %3504 = vmatpush2.msk.msra.mxu0 %vm756_vm4, %v3733_v17  ;;  %3538 = vmatpush1.msk.msra.mxu1 %vm784_vm5, %v3733_v17  ;;  %vm748_vm4 = vcmp.eq.s32.totalorder %v410_v47, %v3843_v10  ;;  %vm776_vm5 = vcmp.eq.s32.totalorder %v424_v48, %v3843_v10 }
  0xe6   : > { %3505 = vmatprep.subr.msk.mxu0 %vm755_vm6, %v3733_v17  ;;  %3539 = vmatprep.subr.msk.mxu1 %vm783_vm7, %v3733_v17  ;;  %vm747_vm6 = vcmp.eq.s32.totalorder %v409_v49, %v3841_v9  ;;  %vm775_vm7 = vcmp.eq.s32.totalorder %v423_v50, %v3841_v9 }
  0xe7   : > { %3506 = vmatpush2.msk.msra.mxu0 %vm754_vm8, %v3733_v17  ;;  %3540 = vmatpush1.msk.msra.mxu1 %vm782_vm9, %v3733_v17  ;;  %vm746_vm8 = vcmp.eq.s32.totalorder %v409_v49, %v3843_v10  ;;  %vm774_vm9 = vcmp.eq.s32.totalorder %v423_v50, %v3843_v10 }
  0xe8   : > { %3507 = vmatprep.subr.msk.mxu0 %vm753_vm10, %v3733_v17  ;;  %3541 = vmatprep.subr.msk.mxu1 %vm781_vm11, %v3733_v17  ;;  %vm745_vm10 = vcmp.eq.s32.totalorder %v408_v51, %v3841_v9  ;;  %vm773_vm11 = vcmp.eq.s32.totalorder %v422_v52, %v3841_v9 }
  0xe9   : > { %3508 = vmatpush2.msk.msra.mxu0 %vm752_vm12, %v3733_v17  ;;  %3542 = vmatpush1.msk.msra.mxu1 %vm780_vm13, %v3733_v17  ;;  %vm744_vm12 = vcmp.eq.s32.totalorder %v408_v51, %v3843_v10  ;;  %vm772_vm13 = vcmp.eq.s32.totalorder %v422_v52, %v3843_v10 }
  0xea   : > { %3509 = vmatprep.subr.msk.mxu0 %vm751_vm14, %v3733_v17  ;;  %3543 = vmatprep.subr.msk.mxu1 %vm779_vm15, %v3733_v17  ;;  %vm743_vm14 = vcmp.eq.s32.totalorder %v407_v53, %v3841_v9  ;;  %vm771_vm15 = vcmp.eq.s32.totalorder %v421_v54, %v3841_v9 }
  0xeb   : > { %3510 = vmatpush2.msk.msra.mxu0 %vm750_vm0, %v3733_v17  ;;  %3544 = vmatpush1.msk.msra.mxu1 %vm778_vm1, %v3733_v17  ;;  %vm742_vm0 = vcmp.eq.s32.totalorder %v407_v53, %v3843_v10  ;;  %vm770_vm1 = vcmp.eq.s32.totalorder %v421_v54, %v3843_v10 }
  0xec   : > { %3511 = vmatprep.subr.msk.mxu0 %vm749_vm2, %v3733_v17  ;;  %3545 = vmatprep.subr.msk.mxu1 %vm777_vm3, %v3733_v17  ;;  %vm741_vm2 = vcmp.eq.s32.totalorder %v406_v55, %v3841_v9  ;;  %vm769_vm3 = vcmp.eq.s32.totalorder %v420_v56, %v3841_v9 }
  0xed   : > { %3512 = vmatpush2.msk.msra.mxu0 %vm748_vm4, %v3733_v17  ;;  %3546 = vmatpush1.msk.msra.mxu1 %vm776_vm5, %v3733_v17  ;;  %vm740_vm4 = vcmp.eq.s32.totalorder %v406_v55, %v3843_v10  ;;  %vm768_vm5 = vcmp.eq.s32.totalorder %v420_v56, %v3843_v10 }
  0xee   : > { %3513 = vmatprep.subr.msk.mxu0 %vm747_vm6, %v3733_v17  ;;  %3547 = vmatprep.subr.msk.mxu1 %vm775_vm7, %v3733_v17  ;;  %vm739_vm6 = vcmp.eq.s32.totalorder %v405_v57, %v3841_v9  ;;  %vm767_vm7 = vcmp.eq.s32.totalorder %v419_v58, %v3841_v9 }
  0xef   : > { %3514 = vmatpush2.msk.msra.mxu0 %vm746_vm8, %v3733_v17  ;;  %3548 = vmatpush1.msk.msra.mxu1 %vm774_vm9, %v3733_v17  ;;  %vm738_vm8 = vcmp.eq.s32.totalorder %v405_v57, %v3843_v10  ;;  %vm766_vm9 = vcmp.eq.s32.totalorder %v419_v58, %v3843_v10 }
  0xf0   : > { %3515 = vmatprep.subr.msk.mxu0 %vm745_vm10, %v3733_v17  ;;  %3549 = vmatprep.subr.msk.mxu1 %vm773_vm11, %v3733_v17  ;;  %vm737_vm10 = vcmp.eq.s32.totalorder %v404_v59, %v3841_v9  ;;  %vm765_vm11 = vcmp.eq.s32.totalorder %v418_v60, %v3841_v9 }
  0xf1   : > { %3516 = vmatpush2.msk.msra.mxu0 %vm744_vm12, %v3733_v17  ;;  %3550 = vmatpush1.msk.msra.mxu1 %vm772_vm13, %v3733_v17  ;;  %vm736_vm12 = vcmp.eq.s32.totalorder %v404_v59, %v3843_v10  ;;  %vm764_vm13 = vcmp.eq.s32.totalorder %v418_v60, %v3843_v10 }
  0xf2   : > { %3517 = vmatprep.subr.msk.mxu0 %vm743_vm14, %v3733_v17  ;;  %3551 = vmatprep.subr.msk.mxu1 %vm771_vm15, %v3733_v17  ;;  %vm735_vm14 = vcmp.eq.s32.totalorder %v403_v61, %v3841_v9  ;;  %vm763_vm15 = vcmp.eq.s32.totalorder %v417_v62, %v3841_v9 }
  0xf3   : > { %3518 = vmatpush2.msk.msra.mxu0 %vm742_vm0, %v3733_v17  ;;  %3552 = vmatpush1.msk.msra.mxu1 %vm770_vm1, %v3733_v17  ;;  %vm734_vm0 = vcmp.eq.s32.totalorder %v403_v61, %v3843_v10  ;;  %vm762_vm1 = vcmp.eq.s32.totalorder %v417_v62, %v3843_v10 }
  0xf4   : > { %3519 = vmatprep.subr.msk.mxu0 %vm741_vm2, %v3733_v17  ;;  %3553 = vmatprep.subr.msk.mxu1 %vm769_vm3, %v3733_v17  ;;  %vm733_vm2 = vcmp.eq.s32.totalorder %v402_v63, %v3841_v9  ;;  %vm761_vm3 = vcmp.eq.s32.totalorder %v416_v2, %v3841_v9 }
  0xf5   : > { %3520 = vmatpush2.msk.msra.mxu0 %vm740_vm4, %v3733_v17  ;;  %3554 = vmatpush1.msk.msra.mxu1 %vm768_vm5, %v3733_v17  ;;  %vm732_vm4 = vcmp.eq.s32.totalorder %v402_v63, %v3843_v10  ;;  %vm760_vm5 = vcmp.eq.s32.totalorder %v416_v2, %v3843_v10 }
  0xf6   : > { %3521 = vmatprep.subr.msk.mxu0 %vm739_vm6, %v3733_v17  ;;  %3555 = vmatprep.subr.msk.mxu1 %vm767_vm7, %v3733_v17  ;;  %vm731_vm6 = vcmp.eq.s32.totalorder %v401_v3, %v3841_v9  ;;  %vm759_vm7 = vcmp.eq.s32.totalorder %v415_v4, %v3841_v9 }
  0xf7   : > { %3522 = vmatpush2.msk.msra.mxu0 %vm738_vm8, %v3733_v17  ;;  %3556 = vmatpush1.msk.msra.mxu1 %vm766_vm9, %v3733_v17  ;;  %vm730_vm8 = vcmp.eq.s32.totalorder %v401_v3, %v3843_v10  ;;  %vm729_vm9 = vcmp.eq.s32.totalorder %v400_v5, %v3841_v9 }
  0xf8   : > { %3523 = vmatprep.subr.msk.mxu0 %vm737_vm10, %v3733_v17  ;;  %3557 = vmatprep.subr.msk.mxu1 %vm765_vm11, %v3733_v17  ;;  %vm758_vm10 = vcmp.eq.s32.totalorder %v415_v4, %v3843_v10  ;;  %vm728_vm11 = vcmp.eq.s32.totalorder %v400_v5, %v3843_v10 }
  0xf9   : > { %3524 = vmatpush2.msk.msra.mxu0 %vm736_vm12, %v3733_v17  ;;  %3558 = vmatpush1.msk.msra.mxu1 %vm764_vm13, %v3733_v17  ;;  %vm727_vm12 = vcmp.eq.s32.totalorder %v399_v6, %v3841_v9  ;;  %vm1576_vm13 = vcmask 982016   ;;  %v1508_v9 = vld [vmem:[#allocation2 + $0xa0] sm:$0xff] }
  0xfa   : > { %3525 = vmatprep.subr.msk.mxu0 %vm735_vm14, %v3733_v17  ;;  %3559 = vmatprep.subr.msk.mxu1 %vm763_vm15, %v3733_v17  ;;  %vm726_vm14 = vcmp.eq.s32.totalorder %v399_v6, %v3843_v10  ;;  %v1507_v10 = vld [vmem:[#allocation2 + $0x98] sm:$0xff]  ;;  %vm2335_vm15 = vcmask 523264  }
  0xfb   : > { %3526 = vmatpush2.msk.msra.mxu0 %vm734_vm0, %v3733_v17  ;;  %3560 = vmatpush1.msk.msra.mxu1 %vm762_vm1, %v3733_v17 }
  0xfc   : > { %3527 = vmatprep.subr.msk.mxu0 %vm733_vm2, %v3733_v17  ;;  %3561 = vmatprep.subr.msk.mxu1 %vm761_vm3, %v3733_v17 }
  0xfd   : > { %3528 = vmatpush2.msk.msra.mxu0 %vm732_vm4, %v3733_v17  ;;  %3562 = vmatpush1.msk.msra.mxu1 %vm760_vm5, %v3733_v17 }
  0xfe   : > { %3529 = vmatprep.subr.msk.mxu0 %vm731_vm6, %v3733_v17  ;;  %3563 = vmatprep.subr.msk.mxu1 %vm759_vm7, %v3733_v17 }
  0xff   : > { %3530 = vmatpush2.msk.msra.mxu0 %vm730_vm8, %v3733_v17  ;;  %2117 = vmatprep.mubr.f32.mxu0 %v1497_v7 }
 0x100   : > { %3531 = vmatprep.subr.msk.mxu0 %vm729_vm9, %v3733_v17  ;;  %3564 = vmatpush1.msk.msra.mxu1 %vm758_vm10, %v3733_v17 }
 0x101   : > { %3532 = vmatpush2.msk.msra.mxu0 %vm728_vm11, %v3733_v17  ;;  %2230 = vmatprep.mubr.f32.mxu1 %v5018_v11 }
 0x102   : > { %3533 = vmatprep.subr.msk.mxu0 %vm727_vm12, %v3733_v17  ;;  %3565 = vmatmul.mubr.msk.f32.vlgmr.msra.gmra.mxu1 %vm1576_vm13, %v1498_v8 }
 0x103   : > { %3534 = vmatpush2.msk.msra.mxu0 %vm726_vm14, %v3733_v17  ;;  %2236 = vmatprep.mubr.f32.mxu1 %v5018_v11  ;;  %v1531_v17 = vld [vmem:[#allocation2 + $0x158] sm:$0xff] }
 0x104   : > { %2118 = vmatmul.mubr.f32.vlgmr.msra.gmra.mxu0 %v1496_v12 }
 0x105   : > { %2123 = vmatprep.mubr.f32.mxu0 %v1508_v9 }
 0x106   : > { %3566 = vmatmul.mubr.msk.f32.gmra.mxu1 %vm1576_vm13, %v1509_v13 }
 0x107   : > { %2242 = vmatprep.mubr.f32.mxu1 %v5018_v11 }
 0x108   : > { %2124 = vmatmul.mubr.f32.gmra.mxu0 %v1507_v10 }
 0x109   : > { %2129 = vmatprep.mubr.f32.mxu0 %v1519_v14 }
 0x10a   : > { %3567 = vmatmul.mubr.msk.f32.gmra.mxu1 %vm1576_vm13, %v1520_v15 }
 0x10b   : > { %2248 = vmatprep.mubr.f32.mxu1 %v5018_v11 }
 0x10c   : > { %2130 = vmatmul.mubr.f32.gmra.mxu0 %v1518_v16 }
 0x10d   : > { %2135 = vmatprep.mubr.f32.mxu0 %v1530_v18 }
 0x10e   : > { %3568 = vmatmul.mubr.msk.f32.gmra.mxu1 %vm1576_vm13, %v1531_v17 }
 0x10f   : > { %2254 = vmatprep.mubr.f32.mxu1 %v5018_v11 }
 0x110   : > { %2136 = vmatmul.mubr.f32.gmra.mxu0 %v1529_v19 }
 0x111   : > { %2141 = vmatprep.mubr.f32.mxu0 %v1541_v20 }
 0x112   : > { %3569 = vmatmul.mubr.msk.f32.gmra.mxu1 %vm1576_vm13, %v1542_v21 }
 0x113   : > { %2260 = vmatprep.mubr.f32.mxu1 %v5018_v11 }
 0x114   : > { %2142 = vmatmul.mubr.f32.gmra.mxu0 %v1540_v22 }
 0x115   : > { %2147 = vmatprep.mubr.f32.mxu0 %v1552_v23 }
 0x116   : > { %3570 = vmatmul.mubr.msk.f32.gmra.mxu1 %vm1576_vm13, %v1553_v24 }
 0x117   : > { %2266 = vmatprep.mubr.f32.mxu1 %v5018_v11 }
 0x118   : > { %2148 = vmatmul.mubr.f32.gmra.mxu0 %v1551_v25 }
 0x119   : > { %2153 = vmatprep.mubr.f32.mxu0 %v1563_v26 }
 0x11a   : > { %3571 = vmatmul.mubr.msk.f32.gmra.mxu1 %vm1576_vm13, %v1564_v27 }
 0x11b   : > { %2272 = vmatprep.mubr.f32.mxu1 %v5018_v11 }
 0x11c   : > { %2154 = vmatmul.mubr.f32.gmra.mxu0 %v1562_v28 }
 0x11d   : > { %2159 = vmatprep.mubr.f32.mxu0 %v1574_v29 }
 0x11e   : > { %3572 = vmatmul.mubr.msk.f32.gmra.mxu1 %vm1576_vm13, %v1575_v30 }
 0x11f   : > { %2424 = vmatprep.mubr.f32.mxu1 %v5018_v11 }
 0x120   : > { %2160 = vmatmul.mubr.f32.gmra.mxu0 %v1573_v31 }
 0x121   : > { %2617 = vmatprep.mubr.f32.mxu0 %v5018_v11 }
 0x134   : > { %v1667_v32 = vpop.f32.mrf.mxu0  ;;  %v1780_v33 = vpop.f32.mrf.mxu1 }
 0x135   : > { %v1781_v34 = vadd.f32 %v1780_v33, %v1667_v32  ;;  %v4776_v32 = vld [vmem:[%s5015_s4 + $0x28] sm:$0xff]  ;;  %v4781_v33 = vld [vmem:[%s5015_s4 + $0x38] sm:$0xff] }
 0x136   : > { %v1669_v35 = vpop.f32.mrf.mxu0  ;;  %v1782_v36 = vpop.f32.mrf.mxu1  ;;  %5045 = vst [vmem:[#allocation13_spill] sm:$0xff] %v4776_v32  ;;  %5046 = vst [vmem:[#allocation14_spill] sm:$0xff] %v4781_v33 }
 0x137   : > { %v1783_v37 = vadd.f32 %v1782_v36, %v1669_v35  ;;  %v3735_v35 = vmov 0  }
 0x138   : > { %3648 = vset.pattern.permute.xlu1 %v3735_v35  ;;  %3647 = vset.pattern.permute.xlu0 %v3735_v35 }
 0x139   : > { %2322 = vperm.xlu1 %3648, %v4776_v32   ;;  %2332 = vperm.xlu0 %3647, %v4781_v33  }
 0x158   : > { %v1673_v38 = vpop.f32.mrf.mxu0  ;;  %v1786_v39 = vpop.f32.mrf.mxu1 }
 0x159   : > { %v1787_v40 = vadd.f32 %v1786_v39, %v1673_v38  ;;  %v4797_v38 = vld [vmem:[%s5015_s4 + $0x30] sm:$0xff] }
 0x15a   : > { %v1675_v41 = vpop.f32.mrf.mxu0  ;;  %v1788_v42 = vpop.f32.mrf.mxu1  ;;  %5048 = vst [vmem:[#allocation16_spill] sm:$0xff] %v4797_v38  ;;  %2327 = vperm.xlu0 %3647, %v4797_v38  }
 0x15b   : > { %v1789_v43 = vadd.f32 %v1788_v42, %v1675_v41  ;;  %v4808_v41 = vld [vmem:[%s5015_s4 + $0x10] sm:$0xff]  ;;  %v4813_v42 = vld [vmem:[%s5015_s4 + $0x18] sm:$0xff] }
 0x15c   : > { %5049 = vst [vmem:[#allocation17_spill] sm:$0xff] %v4808_v41  ;;  %5050 = vst [vmem:[#allocation18_spill] sm:$0xff] %v4813_v42 }
 0x15e   : > { %v1679_v44 = vpop.f32.mrf.mxu0  ;;  %v1792_v45 = vpop.f32.mrf.mxu1  ;;  %2312 = vperm.xlu0 %3647, %v4813_v42  }
 0x15f   : > { %v4735_v46 = vadd.f32 %v1792_v45, %v1679_v44  ;;  %v4824_v45 = vld [vmem:[%s5015_s4] sm:$0xff] }
 0x160   : > { %v1681_v47 = vpop.f32.mrf.mxu0  ;;  %v1794_v48 = vpop.f32.mrf.mxu1  ;;  %5051 = vst [vmem:[#allocation19_spill] sm:$0xff] %v4824_v45 }
 0x161   : > { %v4737_v49 = vadd.f32 %v1794_v48, %v1681_v47  ;;  %v4829_v47 = vld [vmem:[%s5015_s4 + $0x8] sm:$0xff] }
 0x162   : > { %5052 = vst [vmem:[#allocation20_spill] sm:$0xff] %v4829_v47  ;;  %2302 = vperm.xlu0 %3647, %v4829_v47  }
 0x164   : > { %v1685_v50 = vpop.f32.mrf.mxu0  ;;  %v1798_v51 = vpop.f32.mrf.mxu1 }
 0x165   : > { %v4739_v52 = vadd.f32 %v1798_v51, %v1685_v50 }
 0x166   : > { %v1687_v53 = vpop.f32.mrf.mxu0  ;;  %v1800_v54 = vpop.f32.mrf.mxu1 }
 0x167   : > { %v4741_v55 = vadd.f32 %v1800_v54, %v1687_v53 }
 0x16a   : > { %v1691_v56 = vpop.f32.mrf.mxu0  ;;  %v1804_v57 = vpop.f32.mrf.mxu1 }
 0x16b   : > { %v4743_v58 = vadd.f32 %v1804_v57, %v1691_v56 }
 0x16c   : > { %v1693_v59 = vpop.f32.mrf.mxu0  ;;  %v1806_v60 = vpop.f32.mrf.mxu1 }
 0x16d   : > { %v4745_v61 = vadd.f32 %v1806_v60, %v1693_v59 }
 0x170   : > { %v1697_v62 = vpop.f32.mrf.mxu0  ;;  %v1810_v63 = vpop.f32.mrf.mxu1 }
 0x171   : > { %v4747_v2 = vadd.f32 %v1810_v63, %v1697_v62 }
 0x172   : > { %v1699_v3 = vpop.f32.mrf.mxu0  ;;  %v1812_v4 = vpop.f32.mrf.mxu1 }
 0x173   : > { %v4749_v5 = vadd.f32 %v1812_v4, %v1699_v3 }
 0x176   : > { %v1703_v6 = vpop.f32.mrf.mxu0  ;;  %v1816_v7 = vpop.f32.mrf.mxu1 }
 0x177   : > { %v4751_v8 = vadd.f32 %v1816_v7, %v1703_v6 }
 0x178   : > { %v4753_v12 = vpop.f32.mrf.mxu0  ;;  %v4755_v9 = vpop.f32.mrf.mxu1 }
 0x17c   : > { %v4757_v13 = vpop.f32.mrf.mxu0  ;;  %v4761_v14 = vpop.f32.mrf.mxu1 }
 0x17e   : > { %v4759_v10 = vpop.f32.mrf.mxu0  ;;  %v4763_v16 = vpop.f32.mrf.mxu1 }
 0x182   : > { %v1893_v15 = vpop.f32.mrf.mxu0 }
 0x183   : > { %v1894_v18 = vadd.f32 %v1893_v15, %v1781_v34 }
 0x184   : > { %v1895_v17 = vpop.f32.mrf.mxu0 }
 0x185   : > { %v1896_v19 = vadd.f32 %v1895_v17, %v1783_v37  ;;  %v2006_v20 = vpop.f32.mrf.mxu1  ;;  %v4792_v37 = vld [vmem:[%s5015_s4 + $0x20] sm:$0xff] }
 0x186   : > { %v4765_v21 = vadd.f32 %v2006_v20, %v1894_v18  ;;  %5047 = vst [vmem:[#allocation15_spill] sm:$0xff] %v4792_v37  ;;  %2317 = vperm.xlu1 %3648, %v4792_v37  }
 0x187   : > { %v2008_v22 = vpop.f32.mrf.mxu1 }
 0x188   : > { %5041 = vst [vmem:[#allocation9_spill] sm:$0xff] %v4765_v21  ;;  %v1899_v23 = vpop.f32.mrf.mxu0  ;;  %v4767_v24 = vadd.f32 %v2008_v22, %v1896_v19  ;;  %v1825_v21 = vadd.f32 %v4763_v16, %v4759_v10 }
 0x189   : > { %v1900_v25 = vadd.f32 %v1899_v23, %v1787_v40  ;;  %v2012_v26 = vpop.f32.mrf.mxu1 }
 0x18a   : > { %5042 = vst [vmem:[#allocation10_spill] sm:$0xff] %v4767_v24  ;;  %v1901_v27 = vpop.f32.mrf.mxu0  ;;  %2307 = vperm.xlu1 %3648, %v4808_v41  }
 0x18b   : > { %v1902_v28 = vadd.f32 %v1901_v27, %v1789_v43  ;;  %v4769_v29 = vadd.f32 %v2012_v26, %v1900_v25  ;;  %v2014_v30 = vpop.f32.mrf.mxu1 }
 0x18c   : > { %v4787_v36 = vpop.f32.mrf.mxu0 }
 0x18d   : > { %5043 = vst [vmem:[#allocation11_spill] sm:$0xff] %v4769_v29  ;;  %v4771_v31 = vadd.f32 %v2014_v30, %v1902_v28  ;;  %v4783_v34 = vpop.f32.mrf.mxu1 }
 0x18e   : > { %v4803_v40 = vpop.f32.mrf.mxu0  ;;  %2297 = vperm.xlu1 %3648, %v4824_v45  }
 0x18f   : > { %5044 = vst [vmem:[#allocation12_spill] sm:$0xff] %v4771_v31  ;;  %v4799_v39 = vpop.f32.mrf.mxu1 }
 0x190   : > { %v4819_v44 = vpop.f32.mrf.mxu0 }
 0x191   : > { %v4815_v43 = vpop.f32.mrf.mxu1 }
 0x192   : > { %v4835_v50 = vpop.f32.mrf.mxu0 }
 0x193   : > { %v4831_v48 = vpop.f32.mrf.mxu1 }
 0x194   : > { %v1917_v53 = vpop.f32.mrf.mxu0 }
 0x195   : > { %v4837_v51 = vpop.f32.mrf.mxu1  ;;  %v1918_v10 = vadd.f32 %v1917_v53, %v4743_v58 }
 0x196   : > { %v1919_v56 = vpop.f32.mrf.mxu0 }
 0x197   : > { %v4839_v54 = vpop.f32.mrf.mxu1 }
 0x198   : > { %v1923_v59 = vpop.f32.mrf.mxu0 }
 0x199   : > { %v4841_v57 = vpop.f32.mrf.mxu1 }
 0x19a   : > { %v1925_v62 = vpop.f32.mrf.mxu0 }
 0x19b   : > { %v2038_v60 = vpop.f32.mrf.mxu1 }
 0x19c   : > { %v1929_v3 = vpop.f32.mrf.mxu0 }
 0x19d   : > { %v2042_v63 = vpop.f32.mrf.mxu1  ;;  %v1930_v29 = vadd.f32 %v1929_v3, %v4751_v8  ;;  %v1914_v8 = vadd.f32 %v4835_v50, %v4741_v55  ;;  %v1906_v55 = vadd.f32 %v4787_v36, %v4735_v46 }
 0x19e   : > { %v1931_v6 = vpop.f32.mrf.mxu0 }
 0x19f   : > { %v2044_v4 = vpop.f32.mrf.mxu1  ;;  %v2043_v16 = vadd.f32 %v2042_v63, %v1930_v29  ;;  %v2019_v46 = vadd.f32 %v4783_v34, %v1906_v55  ;;  %v5069_v63 = vld [vmem:[#allocation12_spill] sm:$0xff]  ;;  %v5072_v34 = vld [vmem:[#allocation11_spill] sm:$0xff]  ;;  %v5089_v55 = vld [vmem:[#allocation18_spill] sm:$0xff] }
 0x1a0   : > { %v1935_v15 = vpop.f32.mrf.mxu0 }
 0x1a1   : > { %v2048_v7 = vpop.f32.mrf.mxu1 }
 0x1a2   : > { %v1937_v17 = vpop.f32.mrf.mxu0 }
 0x1a3   : > { %v2050_v18 = vpop.f32.mrf.mxu1 }
 0x1c2   : > { %v4843_v19 = vpop.f32.mrf.mxu1 }
 0x1c3   : > { %5053 = vst [vmem:[#allocation21_spill] sm:$0xff] %v4843_v19 }
 0x1c4   : > { %v4845_v20 = vpop.f32.mrf.mxu0  ;;  %v4847_v22 = vpop.f32.mrf.mxu1 }
 0x1c5   : > { %5054 = vst [vmem:[#allocation22_spill] sm:$0xff] %v4845_v20  ;;  %5055 = vst [vmem:[#allocation23_spill] sm:$0xff] %v4847_v22  ;;  %v1819_v20 = vadd.f32 %v4755_v9, %v4753_v12  ;;  %v1920_v12 = vadd.f32 %v1919_v56, %v4745_v61 }
 0x1c6   : > { %v4849_v23 = vpop.f32.mrf.mxu0  ;;  %v4851_v25 = vpop.f32.mrf.mxu1 }
 0x1c7   : > { %5056 = vst [vmem:[#allocation24_spill] sm:$0xff] %v4849_v23  ;;  %5057 = vst [vmem:[#allocation25_spill] sm:$0xff] %v4851_v25  ;;  %v1823_v25 = vadd.f32 %v4761_v14, %v4757_v13  ;;  %v1924_v13 = vadd.f32 %v1923_v59, %v4747_v2  ;;  %v2033_v58 = vadd.f32 %v4839_v54, %v1920_v12 }
 0x1c8   : > { %v4853_v26 = vpop.f32.mrf.mxu0  ;;  %v4855_v27 = vpop.f32.mrf.mxu1 }
 0x1c9   : > { %5058 = vst [vmem:[#allocation26_spill] sm:$0xff] %v4853_v26  ;;  %5059 = vst [vmem:[#allocation27_spill] sm:$0xff] %v4855_v27  ;;  %v1938_v26 = vadd.f32 %v1937_v17, %v1825_v21  ;;  %v2037_v2 = vadd.f32 %v4841_v57, %v1924_v13 }
 0x1ca   : > { %v4857_v28 = vpop.f32.mrf.mxu0  ;;  %v4859_v30 = vpop.f32.mrf.mxu1 }
 0x1cb   : > { %5060 = vst [vmem:[#allocation28_spill] sm:$0xff] %v4857_v28  ;;  %5061 = vst [vmem:[#allocation29_spill] sm:$0xff] %v4859_v30  ;;  %v1926_v28 = vadd.f32 %v1925_v62, %v4749_v5 }
 0x1cc   : > { %v4861_v35 = vpop.f32.mrf.mxu0  ;;  %v4863_v0 = vpop.f32.mrf.mxu1  ;;  %v5083_v12 = vld [vmem:[#allocation23_spill] sm:$0xff] }
 0x1cd   : > { %5062 = vst [vmem:[#allocation30_spill] sm:$0xff] %v4861_v35  ;;  %5063 = vst [vmem:[#allocation31_spill] sm:$0xff] %v4863_v0  ;;  %v1936_v0 = vadd.f32 %v1935_v15, %v1823_v25  ;;  %v2051_v35 = vadd.f32 %v2050_v18, %v1938_v26  ;;  %v2039_v21 = vadd.f32 %v2038_v60, %v1926_v28  ;;  %v5079_v25 = vld [vmem:[#allocation22_spill] sm:$0xff] }
 0x1ce   : > { %v4865_v11 = vpop.f32.mrf.mxu0  ;;  %v4867_v1 = vpop.f32.mrf.mxu1  ;;  %v5082_v13 = vld [vmem:[#allocation25_spill] sm:$0xff] }
 0x1cf   : > { %5064 = vst [vmem:[#allocation32_spill] sm:$0xff] %v4867_v1  ;;  %v1932_v1 = vadd.f32 %v1931_v6, %v1819_v20  ;;  %v2049_v14 = vadd.f32 %v2048_v7, %v1936_v0  ;;  %v1912_v0 = vadd.f32 %v4819_v44, %v4739_v52  ;;  %v2027_v52 = vadd.f32 %v4831_v48, %v1914_v8  ;;  %v2288_v8 = vld [vmem:[%s5013_s2 + $0x8] sm:$0xff] }
 0x1d0   : > { %v4869_v33 = vpop.f32.mrf.mxu0  ;;  %v4871_v38 = vpop.f32.mrf.mxu1  ;;  %v5073_v18 = vld [vmem:[#allocation26_spill] sm:$0xff] }
 0x1d1   : > { %5065 = vst [vmem:[#allocation33_spill] sm:$0xff] %v4871_v38  ;;  %v2045_v9 = vadd.f32 %v2044_v4, %v1932_v1  ;;  %v1908_v1 = vadd.f32 %v4803_v40, %v4737_v49  ;;  %v2025_v57 = vadd.f32 %v4815_v43, %v1912_v0  ;;  %v2292_v0 = vld [vmem:[%s5013_s2 + $0x28] sm:$0xff] }
 0x1d2   : > { %v2139_v37 = vpop.f32.mrf.mxu0  ;;  %v4873_v32 = vpop.f32.mrf.mxu1 }
 0x1d3   : > { %5066 = vst [vmem:[#allocation34_spill] sm:$0xff] %v4873_v32  ;;  %v2021_v40 = vadd.f32 %v4799_v39, %v1908_v1  ;;  %v2140_v54 = vadd.f32 %v2139_v37, %v2027_v52  ;;  %v2138_v36 = vadd.f32 %v4869_v33, %v2025_v57  ;;  %v5070_v39 = vld [vmem:[#allocation28_spill] sm:$0xff]  ;;  %v2126_v33 = vadd.f32 %v5073_v18, %v5072_v34 }
 0x1d4   : > { %v2143_v42 = vpop.f32.mrf.mxu0  ;;  %v2258_v45 = vpop.f32.mrf.mxu1  ;;  %v5067_v48 = vld [vmem:[#allocation30_spill] sm:$0xff]  ;;  %v2128_v37 = vadd.f32 %v5070_v39, %v5069_v63  ;;  %v5077_v20 = vld [vmem:[#allocation31_spill] sm:$0xff]  ;;  %v3737_v1 = vmov 2   ;;  %v3738_v52 = vmov 3  }
 0x1d5   : > { %v2132_v43 = vadd.f32 %v5067_v48, %v2019_v46  ;;  %3651 = vset.pattern.permute.xlu0 %v3737_v1 }
 0x1d6   : > { %v2145_v41 = vpop.f32.mrf.mxu0  ;;  %v2262_v47 = vpop.f32.mrf.mxu1 }
 0x1d7   : > { %v2146_v44 = vadd.f32 %v2145_v41, %v2033_v58  ;;  %v2134_v41 = vadd.f32 %v4865_v11, %v2021_v40  ;;  %v5075_v11 = vld [vmem:[#allocation10_spill] sm:$0xff]  ;;  %v5086_v58 = vld [vmem:[#allocation20_spill] sm:$0xff] }
 0x1d8   : > { %v2149_v19 = vpop.f32.mrf.mxu0  ;;  %v2264_v22 = vpop.f32.mrf.mxu1  ;;  %v5071_v4 = vld [vmem:[#allocation33_spill] sm:$0xff]  ;;  %2687 = vperm.xlu0 %3651, %v5086_v58  }
 0x1d9   : > { %v2150_v50 = vadd.f32 %v2149_v19, %v2037_v2  ;;  %v2253_v7 = vadd.f32 %v5071_v4, %v2140_v54  ;;  %v2293_v2 = vld [vmem:[%s5013_s2 + $0x30] sm:$0xff] }
 0x1da   : > { %v2151_v27 = vpop.f32.mrf.mxu0  ;;  %v2268_v30 = vpop.f32.mrf.mxu1 }
 0x1db   : > { %v2152_v29 = vadd.f32 %v2151_v27, %v2039_v21  ;;  %v5080_v27 = vld [vmem:[#allocation29_spill] sm:$0xff]  ;;  %v2289_v21 = vld [vmem:[%s5013_s2 + $0x10] sm:$0xff] }
 0x1dc   : > { %v2155_v23 = vpop.f32.mrf.mxu0  ;;  %v2270_v24 = vpop.f32.mrf.mxu1  ;;  %v2245_v28 = vadd.f32 %v5080_v27, %v2132_v43 }
 0x1dd   : > { %v2156_v59 = vadd.f32 %v2155_v23, %v2043_v16  ;;  %v2265_v62 = vadd.f32 %v2264_v22, %v2152_v29  ;;  %v2247_v22 = vadd.f32 %v5077_v20, %v2134_v41  ;;  %v5078_v23 = vld [vmem:[#allocation9_spill] sm:$0xff]  ;;  %v2323_v43 = vpop.permute.xlu1 %2322 }
 0x1de   : > { %v2157_v38 = vpop.f32.mrf.mxu0  ;;  %v2274_v32 = vpop.f32.mrf.mxu1  ;;  %v2120_v26 = vadd.f32 %v5079_v25, %v5078_v23  ;;  %v5087_v29 = vld [vmem:[#allocation17_spill] sm:$0xff] }
 0x1df   : > { %v2158_v3 = vadd.f32 %v2157_v38, %v2045_v9  ;;  %v2031_v38 = vadd.f32 %v4837_v51, %v1918_v10  ;;  %v2269_v49 = vadd.f32 %v2268_v30, %v2156_v59  ;;  %v5081_v30 = vld [vmem:[#allocation27_spill] sm:$0xff]  ;;  %v5084_v10 = vld [vmem:[#allocation21_spill] sm:$0xff] }
 0x1e0   : > { %v2161_v31 = vpop.f32.mrf.mxu0  ;;  %v2276_v61 = vpop.f32.mrf.mxu1  ;;  %v2233_v16 = vadd.f32 %v5084_v10, %v2120_v26  ;;  %v2294_v59 = vld [vmem:[%s5013_s2 + $0x38] sm:$0xff] }
 0x1e1   : > { %v2162_v15 = vadd.f32 %v2161_v31, %v2049_v14  ;;  %v2271_v56 = vadd.f32 %v2270_v24, %v2158_v3  ;;  %v2144_v60 = vadd.f32 %v2143_v42, %v2031_v38  ;;  %v2259_v24 = vadd.f32 %v2258_v45, %v2146_v44  ;;  %v5068_v42 = vld [vmem:[#allocation34_spill] sm:$0xff]  ;;  %v5076_v45 = vld [vmem:[#allocation24_spill] sm:$0xff]  ;;  %v2290_v3 = vld [vmem:[%s5013_s2 + $0x18] sm:$0xff] }
 0x1e2   : > { %v2163_v6 = vpop.f32.mrf.mxu0  ;;  %v2122_v19 = vadd.f32 %v5076_v45, %v5075_v11  ;;  %v2239_v14 = vadd.f32 %v5082_v13, %v2126_v33  ;;  %v5090_v38 = vld [vmem:[#allocation13_spill] sm:$0xff]  ;;  %v5093_v44 = vld [vmem:[#allocation14_spill] sm:$0xff] }
 0x1e3   : > { %v2164_v5 = vadd.f32 %v2163_v6, %v2051_v35  ;;  %v2275_v53 = vadd.f32 %v2274_v32, %v2162_v15  ;;  %v2263_v32 = vadd.f32 %v2262_v47, %v2150_v50  ;;  %v2257_v51 = vadd.f32 %v5068_v42, %v2144_v60  ;;  %v5074_v47 = vld [vmem:[#allocation32_spill] sm:$0xff]  ;;  %v5091_v50 = vld [vmem:[#allocation15_spill] sm:$0xff] }
 0x1e4   : > { %v2251_v17 = vadd.f32 %v5074_v47, %v2138_v36  ;;  %v2241_v35 = vadd.f32 %v5081_v30, %v2128_v37  ;;  %v2235_v9 = vadd.f32 %v5083_v12, %v2122_v19  ;;  %v2287_v15 = vld [vmem:[%s5013_s2] sm:$0xff]  ;;  %v5085_v6 = vmov 0.0  }
 0x1e5   : > { %v2277_v31 = vadd.f32 %v2276_v61, %v2164_v5  ;;  %v2291_v5 = vld [vmem:[%s5013_s2 + $0x20] sm:$0xff]  ;;  %v3736_v61 = vmov 1  }
 0x1e6   : > { %3649 = vset.pattern.permute.xlu1 %v3736_v61  ;;  %3652 = vset.pattern.permute.xlu0 %v3736_v61 }
 0x1e7   : > { %2376 = vmatprep.subr.mxu1 %v2277_v31  ;;  %2502 = vperm.xlu1 %3649, %v5086_v58   ;;  %v5088_v31 = vld [vmem:[#allocation19_spill] sm:$0xff] }
 0x1e8   : > { %2377 = vmatpush1.msra.mxu1 %v2275_v53  ;;  %2498 = vperm.xlu0 %3652, %v5088_v31   ;;  %v5092_v53 = vld [vmem:[#allocation16_spill] sm:$0xff] }
 0x1e9   : > { %2378 = vmatprep.subr.mxu1 %v2271_v56 }
 0x1ea   : > { %2379 = vmatpush1.msra.mxu1 %v2269_v49 }
 0x1eb   : > { %2380 = vmatprep.subr.mxu1 %v2265_v62  ;;  %2506 = vperm.xlu1 %3649, %v5087_v29  }
 0x1ec   : > { %2381 = vmatpush1.msra.mxu1 %v2263_v32  ;;  %2510 = vperm.xlu0 %3652, %v5089_v55  }
 0x1ed   : > { %2382 = vmatprep.subr.mxu1 %v2259_v24  ;;  %v2333_v24 = vpop.permute.xlu0 %2332 }
 0x1ee   : > { %2383 = vmatpush1.msra.mxu1 %v2257_v51 }
 0x1ef   : > { %2384 = vmatprep.subr.mxu1 %v2253_v7  ;;  %3650 = vset.pattern.permute.xlu1 %v3737_v1 }
 0x1f0   : > { %2385 = vmatpush1.msra.mxu1 %v2251_v17  ;;  %2683 = vperm.xlu1 %3650, %v5088_v31  }
 0x1f1   : > { %2386 = vmatprep.subr.mxu1 %v2247_v22  ;;  %2518 = vperm.xlu0 %3652, %v5090_v38   ;;  %v2328_v63 = vpop.permute.xlu0 %2327 }
 0x1f2   : > { %2387 = vmatpush1.msra.mxu1 %v2245_v28 }
 0x1f3   : > { %2388 = vmatprep.subr.mxu1 %v2241_v35 }
 0x1f4   : > { %2389 = vmatpush1.msra.mxu1 %v2239_v14  ;;  %3653 = vset.pattern.permute.xlu1 %v3736_v61 }
 0x1f5   : > { %2390 = vmatprep.subr.mxu1 %v2235_v9  ;;  %2514 = vperm.xlu1 %3653, %v5091_v50   ;;  %v2313_v47 = vpop.permute.xlu0 %2312 }
 0x1f6   : > { %2391 = vmatpush1.msra.mxu1 %v2233_v16  ;;  %3656 = vset.pattern.permute.xlu0 %v3737_v1 }
 0x1f7   : > { %3573 = vmatmul.mubr.msk.f32.vlgmr.msra.gmra.mxu1 %vm2335_vm15, %v2287_v15  ;;  %2699 = vperm.xlu0 %3656, %v5091_v50   ;;  %v2494_v50 = vld [vmem:[#allocation4 + $0x28] sm:$0xff] }
 0x1f8   : > { %2430 = vmatprep.mubr.f32.mxu1 %v5085_v6 }
 0x1f9   : > { %3654 = vset.pattern.permute.xlu1 %v3737_v1  ;;  %v2303_v13 = vpop.permute.xlu0 %2302 }
 0x1fa   : > { %2691 = vperm.xlu1 %3654, %v5087_v29  }
 0x1fb   : > { %3574 = vmatmul.mubr.msk.f32.gmra.mxu1 %vm2335_vm15, %v2288_v8  ;;  %2707 = vperm.xlu0 %3656, %v5092_v53  }
 0x1fc   : > { %2436 = vmatprep.mubr.f32.mxu1 %v5085_v6 }
 0x1fe   : > { %2695 = vperm.xlu1 %3654, %v5089_v55   ;;  %v2493_v55 = vld [vmem:[#allocation4 + $0x20] sm:$0xff] }
 0x1ff   : > { %3575 = vmatmul.mubr.msk.f32.gmra.mxu1 %vm2335_vm15, %v2289_v21  ;;  %3658 = vset.pattern.permute.xlu0 %v3738_v52  ;;  %v2495_v52 = vld [vmem:[#allocation4 + $0x30] sm:$0xff] }
 0x200   : > { %2442 = vmatprep.mubr.f32.mxu1 %v5085_v6  ;;  %2757 = vperm.xlu0 %3658, %v5088_v31   ;;  %v2489_v31 = vld [vmem:[#allocation4] sm:$0xff] }
 0x201   : > { %v2318_v37 = vpop.permute.xlu1 %2317 }
 0x202   : > { %3655 = vset.pattern.permute.xlu1 %v3736_v61 }
 0x203   : > { %3576 = vmatmul.mubr.msk.f32.gmra.mxu1 %vm2335_vm15, %v2290_v3  ;;  %2522 = vperm.xlu1 %3655, %v5092_v53   ;;  %v2491_v53 = vld [vmem:[#allocation4 + $0x10] sm:$0xff] }
 0x204   : > { %2448 = vmatprep.mubr.f32.mxu1 %v5085_v6 }
 0x205   : > { %v2308_v20 = vpop.permute.xlu1 %2307 }
 0x207   : > { %3577 = vmatmul.mubr.msk.f32.gmra.mxu1 %vm2335_vm15, %v2291_v5  ;;  %2526 = vperm.xlu1 %3655, %v5093_v44  }
 0x208   : > { %2454 = vmatprep.mubr.f32.mxu1 %v5085_v6 }
 0x209   : > { %v2298_v16 = vpop.permute.xlu1 %2297 }
 0x20b   : > { %3578 = vmatmul.mubr.msk.f32.gmra.mxu1 %vm2335_vm15, %v2292_v0  ;;  %3657 = vset.pattern.permute.xlu1 %v3737_v1 }
 0x20c   : > { %2460 = vmatprep.mubr.f32.mxu1 %v5085_v6  ;;  %2703 = vperm.xlu1 %3657, %v5090_v38   ;;  %v2490_v38 = vld [vmem:[#allocation4 + $0x8] sm:$0xff] }
 0x20f   : > { %3579 = vmatmul.mubr.msk.f32.gmra.mxu1 %vm2335_vm15, %v2293_v2 }
 0x210   : > { %2466 = vmatprep.mubr.f32.mxu1 %v5085_v6  ;;  %2711 = vperm.xlu1 %3657, %v5093_v44   ;;  %v2492_v44 = vld [vmem:[#allocation4 + $0x18] sm:$0xff] }
 0x213   : > { %3580 = vmatmul.mubr.msk.f32.gmra.mxu1 %vm2335_vm15, %v2294_v59 }
 0x214   : > { %2641 = vmatprep.mubr.f32.mxu1 %v5085_v6 }
 0x2b7   : > { %v4978_v56 = vpop.f32.mrf.mxu1 }
 0x2b8   : > { %v2427_v2 = vadd.f32 %v4978_v56, %v2298_v16  ;;  %v2496_v56 = vld [vmem:[#allocation4 + $0x38] sm:$0xff] }
 0x2b9   : > { %v4980_v57 = vpop.f32.mrf.mxu1 }
 0x2ba   : > { %v2429_v5 = vadd.f32 %v4980_v57, %v2298_v16  ;;  %v2473_v29 = vmax.f32 %v2427_v2, 0.0  ;;  %v2503_v57 = vpop.permute.xlu1 %2502 }
 0x2bb   : > { %v2432_v60 = vpop.f32.mrf.mxu1 }
 0x2bc   : > { %v2433_v21 = vadd.f32 %v2432_v60, %v2303_v13  ;;  %v2474_v58 = vmax.f32 %v2429_v5, 0.0 }
 0x2bd   : > { %v2434_v49 = vpop.f32.mrf.mxu1 }
 0x2be   : > { %v2435_v15 = vadd.f32 %v2434_v49, %v2303_v13  ;;  %v2475_v1 = vmax.f32 %v2433_v21, 0.0  ;;  %v2507_v60 = vpop.permute.xlu1 %2506 }
 0x2bf   : > { %v2438_v40 = vpop.f32.mrf.mxu1 }
 0x2c0   : > { %v2439_v9 = vadd.f32 %v2438_v40, %v2308_v20  ;;  %v2476_v61 = vmax.f32 %v2435_v15, 0.0 }
 0x2c1   : > { %v2440_v54 = vpop.f32.mrf.mxu1 }
 0x2c2   : > { %v2441_v14 = vadd.f32 %v2440_v54, %v2308_v20  ;;  %v2477_v59 = vmax.f32 %v2439_v9, 0.0  ;;  %v2684_v49 = vpop.permute.xlu1 %2683  ;;  %v2688_v54 = vpop.permute.xlu0 %2687 }
 0x2c3   : > { %v2444_v62 = vpop.f32.mrf.mxu1 }
 0x2c4   : > { %v2445_v30 = vadd.f32 %v2444_v62, %v2313_v47  ;;  %v2478_v0 = vmax.f32 %v2441_v14, 0.0 }
 0x2c5   : > { %v2446_v46 = vpop.f32.mrf.mxu1 }
 0x2c6   : > { %v2447_v27 = vadd.f32 %v2446_v46, %v2313_v47  ;;  %v2479_v3 = vmax.f32 %v2445_v30, 0.0  ;;  %v2515_v40 = vpop.permute.xlu1 %2514  ;;  %v2499_v46 = vpop.permute.xlu0 %2498 }
 0x2c7   : > { %v2450_v36 = vpop.f32.mrf.mxu1 }
 0x2c8   : > { %v2451_v25 = vadd.f32 %v2450_v36, %v2318_v37  ;;  %v2480_v8 = vmax.f32 %v2447_v27, 0.0 }
 0x2c9   : > { %v2452_v32 = vpop.f32.mrf.mxu1 }
 0x2ca   : > { %v2453_v22 = vadd.f32 %v2452_v32, %v2318_v37  ;;  %v2481_v10 = vmax.f32 %v2451_v25, 0.0  ;;  %v2692_v62 = vpop.permute.xlu1 %2691 }
 0x2cb   : > { %v2456_v41 = vpop.f32.mrf.mxu1 }
 0x2cc   : > { %v2457_v45 = vadd.f32 %v2456_v41, %v2323_v43  ;;  %v2482_v12 = vmax.f32 %v2453_v22, 0.0 }
 0x2cd   : > { %v2458_v48 = vpop.f32.mrf.mxu1 }
 0x2ce   : > { %v2459_v17 = vadd.f32 %v2458_v48, %v2323_v43  ;;  %v2483_v35 = vmax.f32 %v2457_v45, 0.0  ;;  %v4998_v36 = vpop.permute.xlu1 %2695  ;;  %v2511_v43 = vpop.permute.xlu0 %2510 }
 0x2cf   : > { %v2462_v42 = vpop.f32.mrf.mxu1 }
 0x2d0   : > { %v2463_v33 = vadd.f32 %v2462_v42, %v2328_v63  ;;  %v2484_v28 = vmax.f32 %v2459_v17, 0.0 }
 0x2d1   : > { %v2464_v51 = vpop.f32.mrf.mxu1 }
 0x2d2   : > { %v2465_v34 = vadd.f32 %v2464_v51, %v2328_v63  ;;  %v2485_v26 = vmax.f32 %v2463_v33, 0.0 }
 0x2d3   : > { %v2468_v39 = vpop.f32.mrf.mxu1 }
 0x2d4   : > { %v2469_v4 = vadd.f32 %v2468_v39, %v2333_v24  ;;  %v2486_v23 = vmax.f32 %v2465_v34, 0.0  ;;  %v2523_v39 = vpop.permute.xlu1 %2522 }
 0x2d5   : > { %v2470_v7 = vpop.f32.mrf.mxu1 }
 0x2d6   : > { %v2471_v18 = vadd.f32 %v2470_v7, %v2333_v24  ;;  %v2487_v19 = vmax.f32 %v2469_v4, 0.0 }
 0x2d8   : > { %v2488_v11 = vmax.f32 %v2471_v18, 0.0  ;;  %v2527_v30 = vpop.permute.xlu1 %2526 }
 0x2da   : > { %2569 = vmatprep.subr.mxu0 %v2488_v11  ;;  %3591 = vmatprep.subr.mxu1 %v2488_v11 }
 0x2db   : > { %2570 = vmatpush1.msra.mxu0 %v2487_v19  ;;  %3599 = vmatpush1.msra.mxu1 %v2487_v19  ;;  %v2519_v19 = vpop.permute.xlu0 %2518 }
 0x2dc   : > { %2571 = vmatprep.subr.mxu0 %v2486_v23  ;;  %3592 = vmatprep.subr.mxu1 %v2486_v23 }
 0x2dd   : > { %2572 = vmatpush1.msra.mxu0 %v2485_v26  ;;  %3600 = vmatpush1.msra.mxu1 %v2485_v26 }
 0x2de   : > { %2573 = vmatprep.subr.mxu0 %v2484_v28  ;;  %3593 = vmatprep.subr.mxu1 %v2484_v28 }
 0x2df   : > { %2574 = vmatpush1.msra.mxu0 %v2483_v35  ;;  %3601 = vmatpush1.msra.mxu1 %v2483_v35 }
 0x2e0   : > { %2575 = vmatprep.subr.mxu0 %v2482_v12  ;;  %3594 = vmatprep.subr.mxu1 %v2482_v12 }
 0x2e1   : > { %2576 = vmatpush1.msra.mxu0 %v2481_v10  ;;  %3602 = vmatpush1.msra.mxu1 %v2481_v10 }
 0x2e2   : > { %2577 = vmatprep.subr.mxu0 %v2480_v8  ;;  %3595 = vmatprep.subr.mxu1 %v2480_v8 }
 0x2e3   : > { %2578 = vmatpush1.msra.mxu0 %v2479_v3  ;;  %3603 = vmatpush1.msra.mxu1 %v2479_v3 }
 0x2e4   : > { %2579 = vmatprep.subr.mxu0 %v2478_v0  ;;  %3596 = vmatprep.subr.mxu1 %v2478_v0 }
 0x2e5   : > { %2580 = vmatpush1.msra.mxu0 %v2477_v59  ;;  %3604 = vmatpush1.msra.mxu1 %v2477_v59 }
 0x2e6   : > { %2581 = vmatprep.subr.mxu0 %v2476_v61  ;;  %3597 = vmatprep.subr.mxu1 %v2476_v61 }
 0x2e7   : > { %2582 = vmatpush1.msra.mxu0 %v2475_v1  ;;  %3605 = vmatpush1.msra.mxu1 %v2475_v1 }
 0x2e8   : > { %2583 = vmatprep.subr.mxu0 %v2474_v58  ;;  %3598 = vmatprep.subr.mxu1 %v2474_v58 }
 0x2e9   : > { %2584 = vmatpush1.msra.mxu0 %v2473_v29  ;;  %3606 = vmatpush1.msra.mxu1 %v2473_v29  ;;  %v2700_v29 = vpop.permute.xlu0 %2699 }
 0x2ea   : > { %3581 = vmatmul.mubr.msk.f32.vlgmr.msra.gmra.mxu0 %vm2335_vm15, %v2489_v31  ;;  %3585 = vmatmul.mubr.msk.f32.vlgmr.msra.gmra.mxu1 %vm2335_vm15, %v2493_v55 }
 0x2eb   : > { %2623 = vmatprep.mubr.f32.mxu0 %v5085_v6  ;;  %2647 = vmatprep.mubr.f32.mxu1 %v5085_v6 }
 0x2ee   : > { %3582 = vmatmul.mubr.msk.f32.gmra.mxu0 %vm2335_vm15, %v2490_v38  ;;  %3586 = vmatmul.mubr.msk.f32.gmra.mxu1 %vm2335_vm15, %v2494_v50 }
 0x2ef   : > { %2629 = vmatprep.mubr.f32.mxu0 %v5085_v6  ;;  %2653 = vmatprep.mubr.f32.mxu1 %v5085_v6 }
 0x2f2   : > { %3583 = vmatmul.mubr.msk.f32.gmra.mxu0 %vm2335_vm15, %v2491_v53  ;;  %3587 = vmatmul.mubr.msk.f32.gmra.mxu1 %vm2335_vm15, %v2495_v52 }
 0x2f3   : > { %2635 = vmatprep.mubr.f32.mxu0 %v5085_v6  ;;  %2659 = vmatprep.mubr.f32.mxu1 %v5085_v6 }
 0x2f6   : > { %3584 = vmatmul.mubr.msk.f32.gmra.mxu0 %vm2335_vm15, %v2492_v44  ;;  %3588 = vmatmul.mubr.msk.f32.gmra.mxu1 %vm2335_vm15, %v2496_v56 }
 0x3aa   : > { %v2619_v32 = vpop.f32.mrf.mxu0  ;;  %v2643_v41 = vpop.f32.mrf.mxu1 }
 0x3ab   : > { %v2620_v51 = vadd.f32 %v2619_v32, %v2499_v46  ;;  %v2644_v22 = vadd.f32 %v2643_v41, %v2515_v40 }
 0x3ac   : > { %v2621_v24 = vpop.f32.mrf.mxu0  ;;  %v2645_v48 = vpop.f32.mrf.mxu1 }
 0x3ad   : > { %v2622_v37 = vadd.f32 %v2621_v24, %v2499_v46  ;;  %v2666_v17 = vmax.f32 %v2620_v51, 0.0  ;;  %v2646_v13 = vadd.f32 %v2645_v48, %v2515_v40  ;;  %v2674_v3 = vmax.f32 %v2644_v22, 0.0 }
 0x3ae   : > { %v2625_v6 = vpop.f32.mrf.mxu0  ;;  %v2649_v42 = vpop.f32.mrf.mxu1 }
 0x3af   : > { %v2626_v63 = vadd.f32 %v2625_v6, %v2503_v57  ;;  %v2667_v20 = vmax.f32 %v2622_v37, 0.0  ;;  %v2650_v12 = vadd.f32 %v2649_v42, %v2519_v19  ;;  %v2714_v10 = vmul.f32 %v2684_v49, %v2666_v17 }
 0x3b0   : > { %v2627_v4 = vpop.f32.mrf.mxu0  ;;  %v2651_v7 = vpop.f32.mrf.mxu1  ;;  %v2675_v55 = vmax.f32 %v2646_v13, 0.0 }
 0x3b1   : > { %v2668_v34 = vmax.f32 %v2626_v63, 0.0  ;;  %v2628_v18 = vadd.f32 %v2627_v4, %v2503_v57  ;;  %v2715_v21 = vmul.f32 %v2684_v49, %v2667_v20  ;;  %v2652_v0 = vadd.f32 %v2651_v7, %v2519_v19  ;;  %v2704_v57 = vpop.permute.xlu1 %2703 }
 0x3b2   : > { %v2631_v33 = vpop.f32.mrf.mxu0  ;;  %v2655_v47 = vpop.f32.mrf.mxu1  ;;  %v2676_v38 = vmax.f32 %v2650_v12, 0.0  ;;  %v2723_v24 = vmul.f32 %v2700_v29, %v2675_v55 }
 0x3b3   : > { %v2669_v11 = vmax.f32 %v2628_v18, 0.0  ;;  %v2632_v45 = vadd.f32 %v2631_v33, %v2507_v60  ;;  %v2716_v26 = vmul.f32 %v2688_v54, %v2668_v34  ;;  %v2656_v2 = vadd.f32 %v2655_v47, %v2523_v39 }
 0x3b4   : > { %v2633_v23 = vpop.f32.mrf.mxu0  ;;  %v2657_v25 = vpop.f32.mrf.mxu1  ;;  %v2677_v49 = vmax.f32 %v2652_v0, 0.0  ;;  %v2724_v48 = vmul.f32 %v2704_v57, %v2676_v38 }
 0x3b5   : > { %v2670_v27 = vmax.f32 %v2632_v45, 0.0  ;;  %v2634_v28 = vadd.f32 %v2633_v23, %v2507_v60  ;;  %v2717_v35 = vmul.f32 %v2688_v54, %v2669_v11  ;;  %v2730_v59 = vadd.f32 %v2716_v26, %v2714_v10  ;;  %v2712_v37 = vpop.permute.xlu1 %2711 }
 0x3b6   : > { %v2637_v14 = vpop.f32.mrf.mxu0  ;;  %v2661_v9 = vpop.f32.mrf.mxu1  ;;  %v2658_v50 = vadd.f32 %v2657_v25, %v2523_v39  ;;  %v2678_v40 = vmax.f32 %v2656_v2, 0.0  ;;  %v2722_v54 = vmul.f32 %v2700_v29, %v2674_v3  ;;  %v2725_v39 = vmul.f32 %v2704_v57, %v2677_v49 }
 0x3b7   : > { %v2718_v16 = vmul.f32 %v2692_v62, %v2670_v27  ;;  %v2671_v15 = vmax.f32 %v2634_v28, 0.0  ;;  %v2638_v8 = vadd.f32 %v2637_v14, %v2511_v43  ;;  %v2743_v31 = vadd.f32 %v2717_v35, %v2715_v21  ;;  %v5094_v21 = vld [vmem:[#allocation8_spill] sm:$0xff] }
 0x3b8   : > { %v2639_v5 = vpop.f32.mrf.mxu0  ;;  %v2663_v53 = vpop.f32.mrf.mxu1  ;;  %v2662_v60 = vadd.f32 %v2661_v9, %v2527_v30  ;;  %v2679_v51 = vmax.f32 %v2658_v50, 0.0  ;;  %v3739_v28 = vmov 1966171168  }
 0x3b9   : > { %v2719_v61 = vmul.f32 %v2692_v62, %v2671_v15  ;;  %v2672_v1 = vmax.f32 %v2638_v8, 0.0  ;;  %v2640_v58 = vadd.f32 %v2639_v5, %v2511_v43  ;;  %v2731_v52 = vadd.f32 %v2730_v59, %v2718_v16  ;;  %v2708_v43 = vpop.permute.xlu0 %2707 }
 0x3ba   : > { %v2664_v41 = vadd.f32 %v2663_v53, %v2527_v30  ;;  %v2680_v63 = vmax.f32 %v2662_v60, 0.0  ;;  %v2726_v34 = vmul.f32 %v2708_v43, %v2678_v40  ;;  %v2727_v47 = vmul.f32 %v2708_v43, %v2679_v51 }
 0x3bb   : > { %v2720_v44 = vmul.f32 %v4998_v36, %v2672_v1  ;;  %v2673_v56 = vmax.f32 %v2640_v58, 0.0  ;;  %v2744_v46 = vadd.f32 %v2743_v31, %v2719_v61  ;;  %v2766_v30 = vunpack.c.l.s4 %v3739_v28 }
 0x3bc   : > { %v2681_v18 = vmax.f32 %v2664_v41, 0.0  ;;  %v2728_v11 = vmul.f32 %v2712_v37, %v2680_v63  ;;  %v5095_v61 = vlaneseq }
 0x3bd   : > { %v2732_v32 = vadd.f32 %v2731_v52, %v2720_v44  ;;  %v2721_v62 = vmul.f32 %v4998_v36, %v2673_v56  ;;  %v2767_v9 = vunpack.c.0.s8 %v2766_v30  ;;  %v2758_v15 = vpop.permute.xlu0 %2757 }
 0x3be   : > { %v2729_v36 = vmul.f32 %v2712_v37, %v2681_v18  ;;  %vm2782_vm0 = vcmp.lt.s32.totalorder %v5095_v61, 256 }
 0x3bf   : > { %v2745_v6 = vadd.f32 %v2744_v46, %v2721_v62  ;;  %v2733_v42 = vadd.f32 %v2732_v32, %v2722_v54  ;;  %v2770_v3 = vsub.s32 %v2767_v9, %v5094_v21 }
 0x3c1   : > { %v2746_v4 = vadd.f32 %v2745_v6, %v2723_v24  ;;  %v2734_v7 = vadd.f32 %v2733_v42, %v2724_v48 }
 0x3c3   : > { %v2747_v33 = vadd.f32 %v2746_v4, %v2725_v39  ;;  %v2735_v17 = vadd.f32 %v2734_v7, %v2726_v34 }
 0x3c5   : > { %v2748_v45 = vadd.f32 %v2747_v33, %v2727_v47  ;;  %v2736_v19 = vadd.f32 %v2735_v17, %v2728_v11 }
 0x3c7   : > { %v2737_v20 = vrot.slane %v2736_v19, 4  ;;  %v2749_v22 = vadd.f32 %v2748_v45, %v2729_v36 }
 0x3c9   : > { %v2738_v23 = vadd.f32 %v2737_v20, %v2736_v19  ;;  %v2750_v25 = vrot.slane %v2749_v22, 4 }
 0x3cb   : > { %v2751_v26 = vadd.f32 %v2750_v25, %v2749_v22  ;;  %v2739_v27 = vrot.slane %v2738_v23, 2 }
 0x3cd   : > { %v2740_v35 = vadd.f32 %v2739_v27, %v2738_v23  ;;  %v2752_v13 = vrot.slane %v2751_v26, 2 }
 0x3cf   : > { %v2741_v14 = vrot.slane %v2740_v35, 1  ;;  %v2753_v12 = vadd.f32 %v2752_v13, %v2751_v26 }
 0x3d1   : > { %v2742_v10 = vadd.f32 %v2741_v14, %v2740_v35  ;;  %v2754_v16 = vrot.slane %v2753_v12, 1 }
 0x3d3   : > { %v2755_v8 = vadd.f32 %v2754_v16, %v2753_v12  ;;  %v2760_v5 = vadd.f32 %v2758_v15, %v2742_v10 }
 0x3d5   : > { %v2761_v0 = vadd.f32 %v2758_v15, %v2755_v8 }
 0x3d7   : > { %v2764_v2 = vcombine.low %v2760_v5, %v2761_v0 }
 0x3d9   : > { %v2771_v59 = vrot.slane %v2764_v2, %v2770_v3 }
 0x3db   : > { %v2778_v1 = vrot.slane %v2771_v59, %v2770_v3 }
 0x3dd   : > { %2784 = vst.msk [vmem:[%s251_s28] sm:$0x3] %vm2782_vm0, %v2778_v1 }
 0x3de PF: > { %s17_s18 = sadd.s32 1, %s3725_s18  }
 0x3df   : > { %p14_p2 = scmp.ge.s32.totalorder %s17_s18, 4  }
 0x3e1   :  { %16 = sbr.rel (!%p14_p2) target bundleno = 2 (0x2), region = 79 }
 0x3e6   :  { %2805 = vsyncpa [#allocation3], 1 }
 0x3e7   :  { %2807 = vsyncpa [#allocation3 + $0x1], 1 }
 0x3e8   :  { %2808 = vsyncpa [#allocation5], 1 }

</bundles_post_ra>
